<compile_context>
chip_gen: v5e
topology: v5e:2x2
jax: 0.10.0
libtpu: 0.0.40
codegen_flags: <defaults>
</compile_context>

<pallas_src>
import functools
import math

import jax
import jax.numpy as jnp
from jax.experimental import pallas as pl
from jax.experimental.pallas import tpu as pltpu


# ----------------------------------------------------------------------------
# Single fused EncoderLayer kernel (one grid step per batch element).
# ----------------------------------------------------------------------------
def _encoder_layer_kernel(x_ref, maskb_ref, wqkv_ref, bqkv_ref, sel_ref, wzr_ref,
                          vecs_ref, w1_ref, b1_ref, w2_ref,
                          atten_ref, out_ref, ctx2_ref, *, head, d_k):
    S = x_ref.shape[1]
    D = x_ref.shape[2]
    HDk = head * d_k

    x = x_ref[0]                                   # (S, D)  f32
    xb = x.astype(jnp.bfloat16)
    maskb = maskb_ref[0]                           # (S, S)  f32 additive bias (-1e9 where masked)

    # Fused Q/K/V projection: one (S, D) x (D, 3*H*Dk) bf16 matmul, f32 accumulation.
    qkv = jnp.dot(xb, wqkv_ref[...], preferred_element_type=jnp.float32)
    qkv = qkv + bqkv_ref[...]                      # (S, 3*H*Dk)

    inv_sqrt_dk = jnp.float32(1.0 / math.sqrt(d_k))

    # Per-head scaled-dot-product attention; everything stays resident in VMEM.
    # (weights were pre-permuted so head h is the contiguous column block h*d_k.)
    for h in range(head):
        qh = qkv[:, h * d_k:(h + 1) * d_k]                         # (S, Dk) f32
        kh = qkv[:, HDk + h * d_k: HDk + (h + 1) * d_k]
        vh = qkv[:, 2 * HDk + h * d_k: 2 * HDk + (h + 1) * d_k]

        s_h = jnp.dot(qh.astype(jnp.bfloat16), kh.T.astype(jnp.bfloat16),
                      preferred_element_type=jnp.float32) * inv_sqrt_dk + maskb
        m_h = jnp.max(s_h, axis=-1, keepdims=True)
        e_h = jnp.exp(s_h - m_h)
        a_h = e_h * pl.reciprocal(jnp.sum(e_h, axis=-1, keepdims=True), approx=True)

        atten_ref[0, h, :, :] = a_h
        # stack per-head contexts row-wise -> ctx2 has the (H, S, Dk) flat buffer order
        ctx2_ref[h * S:(h + 1) * S, :] = jnp.dot(
            a_h.astype(jnp.bfloat16), vh.astype(jnp.bfloat16),
            preferred_element_type=jnp.float32)

    # torch quirk:  context.view(B, S, H*Dk)  is a RAW row-major view of the
    # (H, S, Dk) buffer, i.e.  ctx_view[s, r*Dk + j] = ctx2[s*H + r, j].
    # Implement  z = ctx_view @ Wz  as a sum of tiny selection matmuls
    # (avoids an in-kernel sublane<->lane reshape):
    ctx2 = ctx2_ref[...].astype(jnp.bfloat16)      # (H*S, Dk)
    z = jnp.zeros((S, D), jnp.float32)
    for r in range(head):
        p_r = jnp.dot(sel_ref[r], ctx2, preferred_element_type=jnp.float32)     # (S, Dk)
        z = z + jnp.dot(p_r.astype(jnp.bfloat16), wzr_ref[r],
                        preferred_element_type=jnp.float32)                      # (S, D)

    vecs = vecs_ref[...]                           # packed (8, D): bz, g1, be1, b2, g2, be2, pad
    bz, g1, be1 = vecs[0:1, :], vecs[1:2, :], vecs[2:3, :]
    b2, g2, be2 = vecs[3:4, :], vecs[4:5, :], vecs[5:6, :]

    # Wz bias + residual + LayerNorm (eps = 1e-5); rsqrt runs on the EUP slot.
    hh = z + bz + x
    mu1 = jnp.mean(hh, axis=-1, keepdims=True)
    c1 = hh - mu1
    var1 = jnp.mean(c1 * c1, axis=-1, keepdims=True)
    y1 = c1 * jax.lax.rsqrt(var1 + 1e-5) * g1 + be1

    # FFN:  fc2(fc1(y1)) + y1  -> LayerNorm   (no activation, per the module).
    h1 = jnp.dot(y1.astype(jnp.bfloat16), w1_ref[...],
                 preferred_element_type=jnp.float32) + b1_ref[...]
    h2 = jnp.dot(h1.astype(jnp.bfloat16), w2_ref[...],
                 preferred_element_type=jnp.float32) + b2
    hf = h2 + y1
    mu2 = jnp.mean(hf, axis=-1, keepdims=True)
    c2 = hf - mu2
    var2 = jnp.mean(c2 * c2, axis=-1, keepdims=True)
    out_ref[0, :, :] = c2 * jax.lax.rsqrt(var2 + 1e-5) * g2 + be2


# ----------------------------------------------------------------------------
# One-time parameter packing (done once, outside the forward path).
# ----------------------------------------------------------------------------
def prepare_params(params, head, d_k):
    D = params["wq"].shape[0]
    HDk = head * d_k

    # .view(B,S,d_k,head).permute(0,3,1,2): head h uses feature columns j*head + h.
    # Permute Q/K/V columns to head-major order so head h is a contiguous block.
    perm = (jnp.arange(head)[:, None] + head * jnp.arange(d_k)[None, :]).reshape(-1)

    def permute(w, b):
        return w[:, perm], b.reshape(-1)[perm]

    wq, bq = permute(params["wq"], params["bq"])
    wk, bk = permute(params["wk"], params["bk"])
    wv, bv = permute(params["wv"], params["bv"])

    return dict(
        wqkv=jnp.concatenate([wq, wk, wv], axis=1).astype(jnp.bfloat16),        # (D, 3*H*Dk)
        bqkv=jnp.concatenate([bq, bk, bv]).reshape(1, 3 * HDk).astype(jnp.float32),
        wzr=params["wz"].reshape(HDk // d_k, d_k, D).astype(jnp.bfloat16),      # (H, Dk, D)
        vecs=jnp.concatenate(
            [params["bz"].reshape(1, D), params["g1"].reshape(1, D),
             params["be1"].reshape(1, D), params["b2"].reshape(1, D),
             params["g2"].reshape(1, D), params["be2"].reshape(1, D),
             jnp.zeros((2, D), jnp.float32)], axis=0).astype(jnp.float32),      # (8, D)
        w1=params["w1"].astype(jnp.bfloat16),                                    # (D, internal)
        b1=params["b1"].reshape(1, -1).astype(jnp.float32),                      # (1, internal)
        w2=params["w2"].astype(jnp.bfloat16),                                    # (internal, D)
    )


# ----------------------------------------------------------------------------
# Forward wrapper: one pallas_call, grid over batch (parallel -> megacore on v7x).
# ----------------------------------------------------------------------------
@functools.partial(jax.jit, static_argnames=("head", "d_k"))
def encoder_layer_forward(prep, x, mask, *, head, d_k):
    B, S, D = x.shape
    HDk = head * d_k
    internal = prep["w1"].shape[1]

    # Additive mask bias (equivalent to masked_fill_ for any row that is not
    # fully masked), prepared once outside the kernel.
    maskb = (mask != 0).astype(jnp.float32) * jnp.float32(-1e9)

    # Selection matrices implementing the raw .view() scramble (see kernel):
    #   sel[r, s, c] = 1  iff  c == s*head + r
    r_idx = jnp.arange(head)[:, None, None]
    s_idx = jnp.arange(S)[None, :, None]
    c_idx = jnp.arange(head * S)[None, None, :]
    sel = (c_idx == s_idx * head + r_idx).astype(jnp.bfloat16)      # (H, S, H*S)

    kernel = functools.partial(_encoder_layer_kernel, head=head, d_k=d_k)

    atten, out = pl.pallas_call(
        kernel,
        grid=(B,),
        in_specs=[
            pl.BlockSpec((1, S, D), lambda b: (b, 0, 0)),             # x (residual)
            pl.BlockSpec((1, S, S), lambda b: (b, 0, 0)),             # additive mask bias
            pl.BlockSpec((D, 3 * HDk), lambda b: (0, 0)),             # fused QKV weight (bf16)
            pl.BlockSpec((1, 3 * HDk), lambda b: (0, 0)),             # fused QKV bias
            pl.BlockSpec((head, S, head * S), lambda b: (0, 0, 0)),   # selection matrices
            pl.BlockSpec((head, d_k, D), lambda b: (0, 0, 0)),        # Wz row blocks (bf16)
            pl.BlockSpec((8, D), lambda b: (0, 0)),                   # packed bz/g1/be1/b2/g2/be2
            pl.BlockSpec((D, internal), lambda b: (0, 0)),            # w1 (bf16)
            pl.BlockSpec((1, internal), lambda b: (0, 0)),            # b1
            pl.BlockSpec((internal, D), lambda b: (0, 0)),            # w2 (bf16)
        ],
        out_specs=[
            pl.BlockSpec((1, head, S, S), lambda b: (b, 0, 0, 0)),    # attention weights
            pl.BlockSpec((1, S, D), lambda b: (b, 0, 0)),             # layer output
        ],
        out_shape=[
            jax.ShapeDtypeStruct((B, head, S, S), jnp.float32),
            jax.ShapeDtypeStruct((B, S, D), jnp.float32),
        ],
        scratch_shapes=[pltpu.VMEM((head * S, d_k), jnp.float32)],    # stacked per-head ctx
        compiler_params=pltpu.CompilerParams(
            dimension_semantics=("parallel",)),
    )(x, maskb, prep["wqkv"], prep["bqkv"], sel, prep["wzr"], prep["vecs"],
      prep["w1"], prep["b1"], prep["w2"])
    return atten, out


# ----------------------------------------------------------------------------
# Pure-JAX reference (mirrors the PyTorch code line by line) for validation.
# ----------------------------------------------------------------------------
def reference_forward(params, x, mask, head, d_k):
    B, S, D = x.shape
    Q = x @ params["wq"] + params["bq"]
    K = x @ params["wk"] + params["bk"]
    V = x @ params["wv"] + params["bv"]
    Qh = Q.reshape(B, S, d_k, head).transpose(0, 3, 1, 2)
    Kh = K.reshape(B, S, d_k, head).transpose(0, 3, 1, 2)
    Vh = V.reshape(B, S, d_k, head).transpose(0, 3, 1, 2)
    scores = jnp.einsum("bhqd,bhkd->bhqk", Qh, Kh) / math.sqrt(d_k)
    scores = jnp.where(mask[:, None, :, :] != 0, jnp.float32(-1e9), scores)
    atten = jax.nn.softmax(scores, axis=-1)
    ctx = jnp.einsum("bhqk,bhkd->bhqd", atten, Vh)
    ctx_flat = ctx.reshape(B, S, head * d_k)          # same raw-view quirk as torch
    z = ctx_flat @ params["wz"] + params["bz"]

    def ln(h, g, b):
        mean = h.mean(-1, keepdims=True)
        var = ((h - mean) ** 2).mean(-1, keepdims=True)
        return (h - mean) / jnp.sqrt(var + 1e-5) * g + b

    y1 = ln(z + x, params["g1"], params["be1"])
    h1 = y1 @ params["w1"] + params["b1"]
    h2 = h1 @ params["w2"] + params["b2"]
    y2 = ln(h2 + y1, params["g2"], params["be2"])
    return atten, y2


if __name__ == "__main__":
    B, S, D = 2, 8, 32
    head, d_k = 4, 8
    internal = 1024   # FFN default internal width

    key = jax.random.PRNGKey(0)
    keys = jax.random.split(key, 16)

    def w(k, shape, scale=0.1):
        return (scale * jax.random.normal(k, shape)).astype(jnp.float32)

    params = dict(
        wq=w(keys[0], (D, head * d_k)), bq=w(keys[1], (head * d_k,)),
        wk=w(keys[2], (D, head * d_k)), bk=w(keys[3], (head * d_k,)),
        wv=w(keys[4], (D, head * d_k)), bv=w(keys[5], (head * d_k,)),
        wz=w(keys[6], (head * d_k, D)), bz=w(keys[7], (1, D)),
        g1=jnp.ones((1, D), jnp.float32), be1=jnp.zeros((1, D), jnp.float32),
        w1=w(keys[8], (D, internal)), b1=w(keys[9], (1, internal)),
        w2=w(keys[10], (internal, D)), b2=w(keys[11], (1, D)),
        g2=jnp.ones((1, D), jnp.float32), be2=jnp.zeros((1, D), jnp.float32),
    )

    x = w(keys[12], (B, S, D), scale=1.0)
    mask = (jax.random.uniform(keys[13], (B, S, S)) < 0.25).astype(jnp.int32)
    # Keep the diagonal unmasked so no row is fully masked; the kernel's additive
    # mask bias is then exactly equivalent to torch's masked_fill_.
    mask = mask * (1 - jnp.eye(S, dtype=jnp.int32))[None, :, :]

    prep = prepare_params(params, head, d_k)
    atten, out = encoder_layer_forward(prep, x, mask, head=head, d_k=d_k)
    jax.block_until_ready((atten, out))

    atten_expected, out_expected = reference_forward(params, x, mask, head, d_k)
    assert atten.shape == (B, head, S, S) and out.shape == (B, S, D)
    # Tolerances account for bf16 MXU operands (f32 accumulation) and the
    # approximate EUP reciprocal used in the softmax.
    assert jnp.allclose(atten, atten_expected, atol=2e-2, rtol=2e-2)
    assert jnp.allclose(out, out_expected, atol=2e-2, rtol=2e-2)

    print("KERNEL_OK")
</pallas_src>

<mosaic_0001>
module attributes {stable_mosaic.version = 11 : i64} {
  func.func @_encoder_layer_kernel(%arg0: i32, %arg1: memref<1x8x32xf32, #tpu.memory_space<vmem>>, %arg2: memref<1x8x8xf32, #tpu.memory_space<vmem>>, %arg3: memref<32x96xbf16, #tpu.memory_space<vmem>>, %arg4: memref<1x96xf32, #tpu.memory_space<vmem>>, %arg5: memref<4x8x32xbf16, #tpu.memory_space<vmem>>, %arg6: memref<4x8x32xbf16, #tpu.memory_space<vmem>>, %arg7: memref<8x32xf32, #tpu.memory_space<vmem>>, %arg8: memref<32x1024xbf16, #tpu.memory_space<vmem>>, %arg9: memref<1x1024xf32, #tpu.memory_space<vmem>>, %arg10: memref<1024x32xbf16, #tpu.memory_space<vmem>>, %arg11: memref<1x4x8x8xf32, #tpu.memory_space<vmem>>, %arg12: memref<1x8x32xf32, #tpu.memory_space<vmem>>, %arg13: memref<32x8xf32, #tpu.memory_space<vmem>>) attributes {dimension_semantics = [#tpu.dimension_semantics<parallel>], iteration_bounds = array<i64: 2>, scalar_prefetch = 0 : i64, scratch_operands = 1 : i64, tpu.core_type = #tpu.core_type<tc>, window_params = [{transform_indices = @transform_0, window_bounds = array<i64: 1, 8, 32>}, {transform_indices = @transform_1, window_bounds = array<i64: 1, 8, 8>}, {pipeline_mode = #tpu.pipeline_mode<synchronous>, transform_indices = @transform_2, window_bounds = array<i64: 32, 96>}, {pipeline_mode = #tpu.pipeline_mode<synchronous>, transform_indices = @transform_3, window_bounds = array<i64: 1, 96>}, {pipeline_mode = #tpu.pipeline_mode<synchronous>, transform_indices = @transform_4, window_bounds = array<i64: 4, 8, 32>}, {pipeline_mode = #tpu.pipeline_mode<synchronous>, transform_indices = @transform_5, window_bounds = array<i64: 4, 8, 32>}, {pipeline_mode = #tpu.pipeline_mode<synchronous>, transform_indices = @transform_6, window_bounds = array<i64: 8, 32>}, {pipeline_mode = #tpu.pipeline_mode<synchronous>, transform_indices = @transform_7, window_bounds = array<i64: 32, 1024>}, {pipeline_mode = #tpu.pipeline_mode<synchronous>, transform_indices = @transform_8, window_bounds = array<i64: 1, 1024>}, {pipeline_mode = #tpu.pipeline_mode<synchronous>, transform_indices = @transform_9, window_bounds = array<i64: 1024, 32>}, {transform_indices = @transform_10, window_bounds = array<i64: 1, 4, 8, 8>}, {transform_indices = @transform_11, window_bounds = array<i64: 1, 8, 32>}]} {
    %c0 = arith.constant 0 : index
    %c0_0 = arith.constant 0 : index
    %c0_1 = arith.constant 0 : index
    %0 = vector.load %arg1[%c0, %c0_0, %c0_1] : memref<1x8x32xf32, #tpu.memory_space<vmem>>, vector<1x8x32xf32>
    %1 = vector.shape_cast %0 : vector<1x8x32xf32> to vector<8x32xf32>
    %2 = arith.truncf %1 : vector<8x32xf32> to vector<8x32xbf16>
    %c0_2 = arith.constant 0 : index
    %c0_3 = arith.constant 0 : index
    %c0_4 = arith.constant 0 : index
    %3 = vector.load %arg2[%c0_2, %c0_3, %c0_4] : memref<1x8x8xf32, #tpu.memory_space<vmem>>, vector<1x8x8xf32>
    %4 = vector.shape_cast %3 : vector<1x8x8xf32> to vector<8x8xf32>
    %c0_5 = arith.constant 0 : index
    %c0_6 = arith.constant 0 : index
    %5 = vector.load %arg3[%c0_5, %c0_6] : memref<32x96xbf16, #tpu.memory_space<vmem>>, vector<32x96xbf16>
    %cst = arith.constant dense<0.000000e+00> : vector<8x96xf32>
    %6 = tpu.matmul %2, %5, %cst {dimension_numbers = #tpu.dot_dimension_numbers<[1], [0], [0], [1], [0, 0, 1, 1], [], []>} : vector<8x32xbf16>, vector<32x96xbf16>, vector<8x96xf32> -> vector<8x96xf32>
    %c0_7 = arith.constant 0 : index
    %c0_8 = arith.constant 0 : index
    %7 = vector.load %arg4[%c0_7, %c0_8] : memref<1x96xf32, #tpu.memory_space<vmem>>, vector<1x96xf32>
    %8 = vector.broadcast %7 : vector<1x96xf32> to vector<8x96xf32>
    %9 = arith.addf %6, %8 : vector<8x96xf32>
    %10 = vector.extract_strided_slice %9 {offsets = [0, 0], sizes = [8, 8], strides = [1, 1]} : vector<8x96xf32> to vector<8x8xf32>
    %11 = vector.extract_strided_slice %9 {offsets = [0, 32], sizes = [8, 8], strides = [1, 1]} : vector<8x96xf32> to vector<8x8xf32>
    %12 = vector.extract_strided_slice %9 {offsets = [0, 64], sizes = [8, 8], strides = [1, 1]} : vector<8x96xf32> to vector<8x8xf32>
    %13 = arith.truncf %10 : vector<8x8xf32> to vector<8x8xbf16>
    %14 = tpu.transpose %11, [1, 0] : vector<8x8xf32> -> vector<8x8xf32>
    %15 = arith.truncf %14 : vector<8x8xf32> to vector<8x8xbf16>
    %cst_9 = arith.constant dense<0.000000e+00> : vector<8x8xf32>
    %16 = tpu.matmul %13, %15, %cst_9 {dimension_numbers = #tpu.dot_dimension_numbers<[1], [0], [0], [1], [0, 0, 1, 1], [], []>} : vector<8x8xbf16>, vector<8x8xbf16>, vector<8x8xf32> -> vector<8x8xf32>
    %cst_10 = arith.constant 0.353553385 : f32
    %17 = vector.broadcast %cst_10 : f32 to vector<8x8xf32>
    %18 = arith.mulf %16, %17 : vector<8x8xf32>
    %19 = arith.addf %18, %4 : vector<8x8xf32>
    %cst_11 = arith.constant dense<0xFF800000> : vector<8xf32>
    %20 = vector.multi_reduction <maximumf>, %19, %cst_11 [1] : vector<8x8xf32> to vector<8xf32>
    %21 = vector.shape_cast %20 : vector<8xf32> to vector<8x1xf32>
    %22 = vector.broadcast %21 : vector<8x1xf32> to vector<8x8xf32>
    %23 = arith.subf %19, %22 : vector<8x8xf32>
    %24 = math.exp %23 : vector<8x8xf32>
    %cst_12 = arith.constant dense<0.000000e+00> : vector<8xf32>
    %25 = vector.multi_reduction <add>, %24, %cst_12 [1] : vector<8x8xf32> to vector<8xf32>
    %26 = vector.shape_cast %25 : vector<8xf32> to vector<8x1xf32>
    %27 = tpu.reciprocal %26 {approx = true} : vector<8x1xf32> -> vector<8x1xf32>
    %28 = vector.broadcast %27 : vector<8x1xf32> to vector<8x8xf32>
    %29 = arith.mulf %24, %28 : vector<8x8xf32>
    %c0_13 = arith.constant 0 : index
    %c0_14 = arith.constant 0 : index
    %c0_15 = arith.constant 0 : index
    %c0_16 = arith.constant 0 : index
    %30 = vector.load %arg11[%c0_13, %c0_14, %c0_15, %c0_16] : memref<1x4x8x8xf32, #tpu.memory_space<vmem>>, vector<1x1x8x8xf32>
    %31 = vector.shape_cast %30 : vector<1x1x8x8xf32> to vector<8x8xf32>
    %32 = vector.shape_cast %29 : vector<8x8xf32> to vector<1x1x8x8xf32>
    tpu.vector_store %arg11[%c0_13, %c0_14, %c0_15, %c0_16], %32 {strides = array<i32>} : memref<1x4x8x8xf32, #tpu.memory_space<vmem>>, vector<1x1x8x8xf32>,
    %33 = arith.truncf %29 : vector<8x8xf32> to vector<8x8xbf16>
    %34 = arith.truncf %12 : vector<8x8xf32> to vector<8x8xbf16>
    %cst_17 = arith.constant dense<0.000000e+00> : vector<8x8xf32>
    %35 = tpu.matmul %33, %34, %cst_17 {dimension_numbers = #tpu.dot_dimension_numbers<[1], [0], [0], [1], [0, 0, 1, 1], [], []>} : vector<8x8xbf16>, vector<8x8xbf16>, vector<8x8xf32> -> vector<8x8xf32>
    %c0_18 = arith.constant 0 : index
    %c0_19 = arith.constant 0 : index
    %36 = vector.load %arg13[%c0_18, %c0_19] : memref<32x8xf32, #tpu.memory_space<vmem>>, vector<8x8xf32>
    tpu.vector_store %arg13[%c0_18, %c0_19], %35 {strides = array<i32>} : memref<32x8xf32, #tpu.memory_space<vmem>>, vector<8x8xf32>,
    %37 = vector.extract_strided_slice %9 {offsets = [0, 8], sizes = [8, 8], strides = [1, 1]} : vector<8x96xf32> to vector<8x8xf32>
    %38 = vector.extract_strided_slice %9 {offsets = [0, 40], sizes = [8, 8], strides = [1, 1]} : vector<8x96xf32> to vector<8x8xf32>
    %39 = vector.extract_strided_slice %9 {offsets = [0, 72], sizes = [8, 8], strides = [1, 1]} : vector<8x96xf32> to vector<8x8xf32>
    %40 = arith.truncf %37 : vector<8x8xf32> to vector<8x8xbf16>
    %41 = tpu.transpose %38, [1, 0] : vector<8x8xf32> -> vector<8x8xf32>
    %42 = arith.truncf %41 : vector<8x8xf32> to vector<8x8xbf16>
    %cst_20 = arith.constant dense<0.000000e+00> : vector<8x8xf32>
    %43 = tpu.matmul %40, %42, %cst_20 {dimension_numbers = #tpu.dot_dimension_numbers<[1], [0], [0], [1], [0, 0, 1, 1], [], []>} : vector<8x8xbf16>, vector<8x8xbf16>, vector<8x8xf32> -> vector<8x8xf32>
    %cst_21 = arith.constant 0.353553385 : f32
    %44 = vector.broadcast %cst_21 : f32 to vector<8x8xf32>
    %45 = arith.mulf %43, %44 : vector<8x8xf32>
    %46 = arith.addf %45, %4 : vector<8x8xf32>
    %cst_22 = arith.constant dense<0xFF800000> : vector<8xf32>
    %47 = vector.multi_reduction <maximumf>, %46, %cst_22 [1] : vector<8x8xf32> to vector<8xf32>
    %48 = vector.shape_cast %47 : vector<8xf32> to vector<8x1xf32>
    %49 = vector.broadcast %48 : vector<8x1xf32> to vector<8x8xf32>
    %50 = arith.subf %46, %49 : vector<8x8xf32>
    %51 = math.exp %50 : vector<8x8xf32>
    %cst_23 = arith.constant dense<0.000000e+00> : vector<8xf32>
    %52 = vector.multi_reduction <add>, %51, %cst_23 [1] : vector<8x8xf32> to vector<8xf32>
    %53 = vector.shape_cast %52 : vector<8xf32> to vector<8x1xf32>
    %54 = tpu.reciprocal %53 {approx = true} : vector<8x1xf32> -> vector<8x1xf32>
    %55 = vector.broadcast %54 : vector<8x1xf32> to vector<8x8xf32>
    %56 = arith.mulf %51, %55 : vector<8x8xf32>
    %c0_24 = arith.constant 0 : index
    %c1 = arith.constant 1 : index
    %c0_25 = arith.constant 0 : index
    %c0_26 = arith.constant 0 : index
    %57 = vector.load %arg11[%c0_24, %c1, %c0_25, %c0_26] : memref<1x4x8x8xf32, #tpu.memory_space<vmem>>, vector<1x1x8x8xf32>
    %58 = vector.shape_cast %57 : vector<1x1x8x8xf32> to vector<8x8xf32>
    %59 = vector.shape_cast %56 : vector<8x8xf32> to vector<1x1x8x8xf32>
    tpu.vector_store %arg11[%c0_24, %c1, %c0_25, %c0_26], %59 {strides = array<i32>} : memref<1x4x8x8xf32, #tpu.memory_space<vmem>>, vector<1x1x8x8xf32>,
    %60 = arith.truncf %56 : vector<8x8xf32> to vector<8x8xbf16>
    %61 = arith.truncf %39 : vector<8x8xf32> to vector<8x8xbf16>
    %cst_27 = arith.constant dense<0.000000e+00> : vector<8x8xf32>
    %62 = tpu.matmul %60, %61, %cst_27 {dimension_numbers = #tpu.dot_dimension_numbers<[1], [0], [0], [1], [0, 0, 1, 1], [], []>} : vector<8x8xbf16>, vector<8x8xbf16>, vector<8x8xf32> -> vector<8x8xf32>
    %c8 = arith.constant 8 : index
    %c0_28 = arith.constant 0 : index
    %63 = vector.load %arg13[%c8, %c0_28] : memref<32x8xf32, #tpu.memory_space<vmem>>, vector<8x8xf32>
    tpu.vector_store %arg13[%c8, %c0_28], %62 {strides = array<i32>} : memref<32x8xf32, #tpu.memory_space<vmem>>, vector<8x8xf32>,
    %64 = vector.extract_strided_slice %9 {offsets = [0, 16], sizes = [8, 8], strides = [1, 1]} : vector<8x96xf32> to vector<8x8xf32>
    %65 = vector.extract_strided_slice %9 {offsets = [0, 48], sizes = [8, 8], strides = [1, 1]} : vector<8x96xf32> to vector<8x8xf32>
    %66 = vector.extract_strided_slice %9 {offsets = [0, 80], sizes = [8, 8], strides = [1, 1]} : vector<8x96xf32> to vector<8x8xf32>
    %67 = arith.truncf %64 : vector<8x8xf32> to vector<8x8xbf16>
    %68 = tpu.transpose %65, [1, 0] : vector<8x8xf32> -> vector<8x8xf32>
    %69 = arith.truncf %68 : vector<8x8xf32> to vector<8x8xbf16>
    %cst_29 = arith.constant dense<0.000000e+00> : vector<8x8xf32>
    %70 = tpu.matmul %67, %69, %cst_29 {dimension_numbers = #tpu.dot_dimension_numbers<[1], [0], [0], [1], [0, 0, 1, 1], [], []>} : vector<8x8xbf16>, vector<8x8xbf16>, vector<8x8xf32> -> vector<8x8xf32>
    %cst_30 = arith.constant 0.353553385 : f32
    %71 = vector.broadcast %cst_30 : f32 to vector<8x8xf32>
    %72 = arith.mulf %70, %71 : vector<8x8xf32>
    %73 = arith.addf %72, %4 : vector<8x8xf32>
    %cst_31 = arith.constant dense<0xFF800000> : vector<8xf32>
    %74 = vector.multi_reduction <maximumf>, %73, %cst_31 [1] : vector<8x8xf32> to vector<8xf32>
    %75 = vector.shape_cast %74 : vector<8xf32> to vector<8x1xf32>
    %76 = vector.broadcast %75 : vector<8x1xf32> to vector<8x8xf32>
    %77 = arith.subf %73, %76 : vector<8x8xf32>
    %78 = math.exp %77 : vector<8x8xf32>
    %cst_32 = arith.constant dense<0.000000e+00> : vector<8xf32>
    %79 = vector.multi_reduction <add>, %78, %cst_32 [1] : vector<8x8xf32> to vector<8xf32>
    %80 = vector.shape_cast %79 : vector<8xf32> to vector<8x1xf32>
    %81 = tpu.reciprocal %80 {approx = true} : vector<8x1xf32> -> vector<8x1xf32>
    %82 = vector.broadcast %81 : vector<8x1xf32> to vector<8x8xf32>
    %83 = arith.mulf %78, %82 : vector<8x8xf32>
    %c0_33 = arith.constant 0 : index
    %c2 = arith.constant 2 : index
    %c0_34 = arith.constant 0 : index
    %c0_35 = arith.constant 0 : index
    %84 = vector.load %arg11[%c0_33, %c2, %c0_34, %c0_35] : memref<1x4x8x8xf32, #tpu.memory_space<vmem>>, vector<1x1x8x8xf32>
    %85 = vector.shape_cast %84 : vector<1x1x8x8xf32> to vector<8x8xf32>
    %86 = vector.shape_cast %83 : vector<8x8xf32> to vector<1x1x8x8xf32>
    tpu.vector_store %arg11[%c0_33, %c2, %c0_34, %c0_35], %86 {strides = array<i32>} : memref<1x4x8x8xf32, #tpu.memory_space<vmem>>, vector<1x1x8x8xf32>,
    %87 = arith.truncf %83 : vector<8x8xf32> to vector<8x8xbf16>
    %88 = arith.truncf %66 : vector<8x8xf32> to vector<8x8xbf16>
    %cst_36 = arith.constant dense<0.000000e+00> : vector<8x8xf32>
    %89 = tpu.matmul %87, %88, %cst_36 {dimension_numbers = #tpu.dot_dimension_numbers<[1], [0], [0], [1], [0, 0, 1, 1], [], []>} : vector<8x8xbf16>, vector<8x8xbf16>, vector<8x8xf32> -> vector<8x8xf32>
    %c16 = arith.constant 16 : index
    %c0_37 = arith.constant 0 : index
    %90 = vector.load %arg13[%c16, %c0_37] : memref<32x8xf32, #tpu.memory_space<vmem>>, vector<8x8xf32>
    tpu.vector_store %arg13[%c16, %c0_37], %89 {strides = array<i32>} : memref<32x8xf32, #tpu.memory_space<vmem>>, vector<8x8xf32>,
    %91 = vector.extract_strided_slice %9 {offsets = [0, 24], sizes = [8, 8], strides = [1, 1]} : vector<8x96xf32> to vector<8x8xf32>
    %92 = vector.extract_strided_slice %9 {offsets = [0, 56], sizes = [8, 8], strides = [1, 1]} : vector<8x96xf32> to vector<8x8xf32>
    %93 = vector.extract_strided_slice %9 {offsets = [0, 88], sizes = [8, 8], strides = [1, 1]} : vector<8x96xf32> to vector<8x8xf32>
    %94 = arith.truncf %91 : vector<8x8xf32> to vector<8x8xbf16>
    %95 = tpu.transpose %92, [1, 0] : vector<8x8xf32> -> vector<8x8xf32>
    %96 = arith.truncf %95 : vector<8x8xf32> to vector<8x8xbf16>
    %cst_38 = arith.constant dense<0.000000e+00> : vector<8x8xf32>
    %97 = tpu.matmul %94, %96, %cst_38 {dimension_numbers = #tpu.dot_dimension_numbers<[1], [0], [0], [1], [0, 0, 1, 1], [], []>} : vector<8x8xbf16>, vector<8x8xbf16>, vector<8x8xf32> -> vector<8x8xf32>
    %cst_39 = arith.constant 0.353553385 : f32
    %98 = vector.broadcast %cst_39 : f32 to vector<8x8xf32>
    %99 = arith.mulf %97, %98 : vector<8x8xf32>
    %100 = arith.addf %99, %4 : vector<8x8xf32>
    %cst_40 = arith.constant dense<0xFF800000> : vector<8xf32>
    %101 = vector.multi_reduction <maximumf>, %100, %cst_40 [1] : vector<8x8xf32> to vector<8xf32>
    %102 = vector.shape_cast %101 : vector<8xf32> to vector<8x1xf32>
    %103 = vector.broadcast %102 : vector<8x1xf32> to vector<8x8xf32>
    %104 = arith.subf %100, %103 : vector<8x8xf32>
    %105 = math.exp %104 : vector<8x8xf32>
    %cst_41 = arith.constant dense<0.000000e+00> : vector<8xf32>
    %106 = vector.multi_reduction <add>, %105, %cst_41 [1] : vector<8x8xf32> to vector<8xf32>
    %107 = vector.shape_cast %106 : vector<8xf32> to vector<8x1xf32>
    %108 = tpu.reciprocal %107 {approx = true} : vector<8x1xf32> -> vector<8x1xf32>
    %109 = vector.broadcast %108 : vector<8x1xf32> to vector<8x8xf32>
    %110 = arith.mulf %105, %109 : vector<8x8xf32>
    %c0_42 = arith.constant 0 : index
    %c3 = arith.constant 3 : index
    %c0_43 = arith.constant 0 : index
    %c0_44 = arith.constant 0 : index
    %111 = vector.load %arg11[%c0_42, %c3, %c0_43, %c0_44] : memref<1x4x8x8xf32, #tpu.memory_space<vmem>>, vector<1x1x8x8xf32>
    %112 = vector.shape_cast %111 : vector<1x1x8x8xf32> to vector<8x8xf32>
    %113 = vector.shape_cast %110 : vector<8x8xf32> to vector<1x1x8x8xf32>
    tpu.vector_store %arg11[%c0_42, %c3, %c0_43, %c0_44], %113 {strides = array<i32>} : memref<1x4x8x8xf32, #tpu.memory_space<vmem>>, vector<1x1x8x8xf32>,
    %114 = arith.truncf %110 : vector<8x8xf32> to vector<8x8xbf16>
    %115 = arith.truncf %93 : vector<8x8xf32> to vector<8x8xbf16>
    %cst_45 = arith.constant dense<0.000000e+00> : vector<8x8xf32>
    %116 = tpu.matmul %114, %115, %cst_45 {dimension_numbers = #tpu.dot_dimension_numbers<[1], [0], [0], [1], [0, 0, 1, 1], [], []>} : vector<8x8xbf16>, vector<8x8xbf16>, vector<8x8xf32> -> vector<8x8xf32>
    %c24 = arith.constant 24 : index
    %c0_46 = arith.constant 0 : index
    %117 = vector.load %arg13[%c24, %c0_46] : memref<32x8xf32, #tpu.memory_space<vmem>>, vector<8x8xf32>
    tpu.vector_store %arg13[%c24, %c0_46], %116 {strides = array<i32>} : memref<32x8xf32, #tpu.memory_space<vmem>>, vector<8x8xf32>,
    %c0_47 = arith.constant 0 : index
    %c0_48 = arith.constant 0 : index
    %118 = vector.load %arg13[%c0_47, %c0_48] : memref<32x8xf32, #tpu.memory_space<vmem>>, vector<32x8xf32>
    %119 = arith.truncf %118 : vector<32x8xf32> to vector<32x8xbf16>
    %cst_49 = arith.constant 0.000000e+00 : f32
    %120 = vector.broadcast %cst_49 : f32 to vector<8x32xf32>
    %c0_50 = arith.constant 0 : index
    %c0_51 = arith.constant 0 : index
    %c0_52 = arith.constant 0 : index
    %121 = vector.load %arg5[%c0_50, %c0_51, %c0_52] : memref<4x8x32xbf16, #tpu.memory_space<vmem>>, vector<1x8x32xbf16>
    %122 = vector.shape_cast %121 : vector<1x8x32xbf16> to vector<8x32xbf16>
    %cst_53 = arith.constant dense<0.000000e+00> : vector<8x8xf32>
    %123 = tpu.matmul %122, %119, %cst_53 {dimension_numbers = #tpu.dot_dimension_numbers<[1], [0], [0], [1], [0, 0, 1, 1], [], []>} : vector<8x32xbf16>, vector<32x8xbf16>, vector<8x8xf32> -> vector<8x8xf32>
    %124 = arith.truncf %123 : vector<8x8xf32> to vector<8x8xbf16>
    %c0_54 = arith.constant 0 : index
    %c0_55 = arith.constant 0 : index
    %c0_56 = arith.constant 0 : index
    %125 = vector.load %arg6[%c0_54, %c0_55, %c0_56] : memref<4x8x32xbf16, #tpu.memory_space<vmem>>, vector<1x8x32xbf16>
    %126 = vector.shape_cast %125 : vector<1x8x32xbf16> to vector<8x32xbf16>
    %cst_57 = arith.constant dense<0.000000e+00> : vector<8x32xf32>
    %127 = tpu.matmul %124, %126, %cst_57 {dimension_numbers = #tpu.dot_dimension_numbers<[1], [0], [0], [1], [0, 0, 1, 1], [], []>} : vector<8x8xbf16>, vector<8x32xbf16>, vector<8x32xf32> -> vector<8x32xf32>
    %128 = arith.addf %120, %127 : vector<8x32xf32>
    %c1_58 = arith.constant 1 : index
    %c0_59 = arith.constant 0 : index
    %c0_60 = arith.constant 0 : index
    %129 = vector.load %arg5[%c1_58, %c0_59, %c0_60] : memref<4x8x32xbf16, #tpu.memory_space<vmem>>, vector<1x8x32xbf16>
    %130 = vector.shape_cast %129 : vector<1x8x32xbf16> to vector<8x32xbf16>
    %cst_61 = arith.constant dense<0.000000e+00> : vector<8x8xf32>
    %131 = tpu.matmul %130, %119, %cst_61 {dimension_numbers = #tpu.dot_dimension_numbers<[1], [0], [0], [1], [0, 0, 1, 1], [], []>} : vector<8x32xbf16>, vector<32x8xbf16>, vector<8x8xf32> -> vector<8x8xf32>
    %132 = arith.truncf %131 : vector<8x8xf32> to vector<8x8xbf16>
    %c1_62 = arith.constant 1 : index
    %c0_63 = arith.constant 0 : index
    %c0_64 = arith.constant 0 : index
    %133 = vector.load %arg6[%c1_62, %c0_63, %c0_64] : memref<4x8x32xbf16, #tpu.memory_space<vmem>>, vector<1x8x32xbf16>
    %134 = vector.shape_cast %133 : vector<1x8x32xbf16> to vector<8x32xbf16>
    %cst_65 = arith.constant dense<0.000000e+00> : vector<8x32xf32>
    %135 = tpu.matmul %132, %134, %cst_65 {dimension_numbers = #tpu.dot_dimension_numbers<[1], [0], [0], [1], [0, 0, 1, 1], [], []>} : vector<8x8xbf16>, vector<8x32xbf16>, vector<8x32xf32> -> vector<8x32xf32>
    %136 = arith.addf %128, %135 : vector<8x32xf32>
    %c2_66 = arith.constant 2 : index
    %c0_67 = arith.constant 0 : index
    %c0_68 = arith.constant 0 : index
    %137 = vector.load %arg5[%c2_66, %c0_67, %c0_68] : memref<4x8x32xbf16, #tpu.memory_space<vmem>>, vector<1x8x32xbf16>
    %138 = vector.shape_cast %137 : vector<1x8x32xbf16> to vector<8x32xbf16>
    %cst_69 = arith.constant dense<0.000000e+00> : vector<8x8xf32>
    %139 = tpu.matmul %138, %119, %cst_69 {dimension_numbers = #tpu.dot_dimension_numbers<[1], [0], [0], [1], [0, 0, 1, 1], [], []>} : vector<8x32xbf16>, vector<32x8xbf16>, vector<8x8xf32> -> vector<8x8xf32>
    %140 = arith.truncf %139 : vector<8x8xf32> to vector<8x8xbf16>
    %c2_70 = arith.constant 2 : index
    %c0_71 = arith.constant 0 : index
    %c0_72 = arith.constant 0 : index
    %141 = vector.load %arg6[%c2_70, %c0_71, %c0_72] : memref<4x8x32xbf16, #tpu.memory_space<vmem>>, vector<1x8x32xbf16>
    %142 = vector.shape_cast %141 : vector<1x8x32xbf16> to vector<8x32xbf16>
    %cst_73 = arith.constant dense<0.000000e+00> : vector<8x32xf32>
    %143 = tpu.matmul %140, %142, %cst_73 {dimension_numbers = #tpu.dot_dimension_numbers<[1], [0], [0], [1], [0, 0, 1, 1], [], []>} : vector<8x8xbf16>, vector<8x32xbf16>, vector<8x32xf32> -> vector<8x32xf32>
    %144 = arith.addf %136, %143 : vector<8x32xf32>
    %c3_74 = arith.constant 3 : index
    %c0_75 = arith.constant 0 : index
    %c0_76 = arith.constant 0 : index
    %145 = vector.load %arg5[%c3_74, %c0_75, %c0_76] : memref<4x8x32xbf16, #tpu.memory_space<vmem>>, vector<1x8x32xbf16>
    %146 = vector.shape_cast %145 : vector<1x8x32xbf16> to vector<8x32xbf16>
    %cst_77 = arith.constant dense<0.000000e+00> : vector<8x8xf32>
    %147 = tpu.matmul %146, %119, %cst_77 {dimension_numbers = #tpu.dot_dimension_numbers<[1], [0], [0], [1], [0, 0, 1, 1], [], []>} : vector<8x32xbf16>, vector<32x8xbf16>, vector<8x8xf32> -> vector<8x8xf32>
    %148 = arith.truncf %147 : vector<8x8xf32> to vector<8x8xbf16>
    %c3_78 = arith.constant 3 : index
    %c0_79 = arith.constant 0 : index
    %c0_80 = arith.constant 0 : index
    %149 = vector.load %arg6[%c3_78, %c0_79, %c0_80] : memref<4x8x32xbf16, #tpu.memory_space<vmem>>, vector<1x8x32xbf16>
    %150 = vector.shape_cast %149 : vector<1x8x32xbf16> to vector<8x32xbf16>
    %cst_81 = arith.constant dense<0.000000e+00> : vector<8x32xf32>
    %151 = tpu.matmul %148, %150, %cst_81 {dimension_numbers = #tpu.dot_dimension_numbers<[1], [0], [0], [1], [0, 0, 1, 1], [], []>} : vector<8x8xbf16>, vector<8x32xbf16>, vector<8x32xf32> -> vector<8x32xf32>
    %152 = arith.addf %144, %151 : vector<8x32xf32>
    %c0_82 = arith.constant 0 : index
    %c0_83 = arith.constant 0 : index
    %153 = vector.load %arg7[%c0_82, %c0_83] : memref<8x32xf32, #tpu.memory_space<vmem>>, vector<8x32xf32>
    %154 = vector.extract_strided_slice %153 {offsets = [0, 0], sizes = [1, 32], strides = [1, 1]} : vector<8x32xf32> to vector<1x32xf32>
    %155 = vector.extract_strided_slice %153 {offsets = [1, 0], sizes = [1, 32], strides = [1, 1]} : vector<8x32xf32> to vector<1x32xf32>
    %156 = vector.extract_strided_slice %153 {offsets = [2, 0], sizes = [1, 32], strides = [1, 1]} : vector<8x32xf32> to vector<1x32xf32>
    %157 = vector.extract_strided_slice %153 {offsets = [3, 0], sizes = [1, 32], strides = [1, 1]} : vector<8x32xf32> to vector<1x32xf32>
    %158 = vector.extract_strided_slice %153 {offsets = [4, 0], sizes = [1, 32], strides = [1, 1]} : vector<8x32xf32> to vector<1x32xf32>
    %159 = vector.extract_strided_slice %153 {offsets = [5, 0], sizes = [1, 32], strides = [1, 1]} : vector<8x32xf32> to vector<1x32xf32>
    %160 = vector.broadcast %154 : vector<1x32xf32> to vector<8x32xf32>
    %161 = arith.addf %152, %160 : vector<8x32xf32>
    %162 = arith.addf %161, %1 : vector<8x32xf32>
    %cst_84 = arith.constant dense<0.000000e+00> : vector<8xf32>
    %163 = vector.multi_reduction <add>, %162, %cst_84 [1] : vector<8x32xf32> to vector<8xf32>
    %164 = vector.shape_cast %163 : vector<8xf32> to vector<8x1xf32>
    %cst_85 = arith.constant 3.200000e+01 : f32
    %165 = vector.broadcast %cst_85 : f32 to vector<8x1xf32>
    %166 = arith.divf %164, %165 : vector<8x1xf32>
    %167 = vector.broadcast %166 : vector<8x1xf32> to vector<8x32xf32>
    %168 = arith.subf %162, %167 : vector<8x32xf32>
    %169 = arith.mulf %168, %168 : vector<8x32xf32>
    %cst_86 = arith.constant dense<0.000000e+00> : vector<8xf32>
    %170 = vector.multi_reduction <add>, %169, %cst_86 [1] : vector<8x32xf32> to vector<8xf32>
    %171 = vector.shape_cast %170 : vector<8xf32> to vector<8x1xf32>
    %cst_87 = arith.constant 3.200000e+01 : f32
    %172 = vector.broadcast %cst_87 : f32 to vector<8x1xf32>
    %173 = arith.divf %171, %172 : vector<8x1xf32>
    %cst_88 = arith.constant 9.99999974E-6 : f32
    %174 = vector.broadcast %cst_88 : f32 to vector<8x1xf32>
    %175 = arith.addf %173, %174 : vector<8x1xf32>
    %176 = math.rsqrt %175 : vector<8x1xf32>
    %177 = vector.broadcast %176 : vector<8x1xf32> to vector<8x32xf32>
    %178 = arith.mulf %168, %177 : vector<8x32xf32>
    %179 = vector.broadcast %155 : vector<1x32xf32> to vector<8x32xf32>
    %180 = arith.mulf %178, %179 : vector<8x32xf32>
    %181 = vector.broadcast %156 : vector<1x32xf32> to vector<8x32xf32>
    %182 = arith.addf %180, %181 : vector<8x32xf32>
    %183 = arith.truncf %182 : vector<8x32xf32> to vector<8x32xbf16>
    %c0_89 = arith.constant 0 : index
    %c0_90 = arith.constant 0 : index
    %184 = vector.load %arg8[%c0_89, %c0_90] : memref<32x1024xbf16, #tpu.memory_space<vmem>>, vector<32x1024xbf16>
    %cst_91 = arith.constant dense<0.000000e+00> : vector<8x1024xf32>
    %185 = tpu.matmul %183, %184, %cst_91 {dimension_numbers = #tpu.dot_dimension_numbers<[1], [0], [0], [1], [0, 0, 1, 1], [], []>} : vector<8x32xbf16>, vector<32x1024xbf16>, vector<8x1024xf32> -> vector<8x1024xf32>
    %c0_92 = arith.constant 0 : index
    %c0_93 = arith.constant 0 : index
    %186 = vector.load %arg9[%c0_92, %c0_93] : memref<1x1024xf32, #tpu.memory_space<vmem>>, vector<1x1024xf32>
    %187 = vector.broadcast %186 : vector<1x1024xf32> to vector<8x1024xf32>
    %188 = arith.addf %185, %187 : vector<8x1024xf32>
    %189 = arith.truncf %188 : vector<8x1024xf32> to vector<8x1024xbf16>
    %c0_94 = arith.constant 0 : index
    %c0_95 = arith.constant 0 : index
    %190 = vector.load %arg10[%c0_94, %c0_95] : memref<1024x32xbf16, #tpu.memory_space<vmem>>, vector<1024x32xbf16>
    %cst_96 = arith.constant dense<0.000000e+00> : vector<8x32xf32>
    %191 = tpu.matmul %189, %190, %cst_96 {dimension_numbers = #tpu.dot_dimension_numbers<[1], [0], [0], [1], [0, 0, 1, 1], [], []>} : vector<8x1024xbf16>, vector<1024x32xbf16>, vector<8x32xf32> -> vector<8x32xf32>
    %192 = vector.broadcast %157 : vector<1x32xf32> to vector<8x32xf32>
    %193 = arith.addf %191, %192 : vector<8x32xf32>
    %194 = arith.addf %193, %182 : vector<8x32xf32>
    %cst_97 = arith.constant dense<0.000000e+00> : vector<8xf32>
    %195 = vector.multi_reduction <add>, %194, %cst_97 [1] : vector<8x32xf32> to vector<8xf32>
    %196 = vector.shape_cast %195 : vector<8xf32> to vector<8x1xf32>
    %cst_98 = arith.constant 3.200000e+01 : f32
    %197 = vector.broadcast %cst_98 : f32 to vector<8x1xf32>
    %198 = arith.divf %196, %197 : vector<8x1xf32>
    %199 = vector.broadcast %198 : vector<8x1xf32> to vector<8x32xf32>
    %200 = arith.subf %194, %199 : vector<8x32xf32>
    %201 = arith.mulf %200, %200 : vector<8x32xf32>
    %cst_99 = arith.constant dense<0.000000e+00> : vector<8xf32>
    %202 = vector.multi_reduction <add>, %201, %cst_99 [1] : vector<8x32xf32> to vector<8xf32>
    %203 = vector.shape_cast %202 : vector<8xf32> to vector<8x1xf32>
    %cst_100 = arith.constant 3.200000e+01 : f32
    %204 = vector.broadcast %cst_100 : f32 to vector<8x1xf32>
    %205 = arith.divf %203, %204 : vector<8x1xf32>
    %cst_101 = arith.constant 9.99999974E-6 : f32
    %206 = vector.broadcast %cst_101 : f32 to vector<8x1xf32>
    %207 = arith.addf %205, %206 : vector<8x1xf32>
    %208 = math.rsqrt %207 : vector<8x1xf32>
    %209 = vector.broadcast %208 : vector<8x1xf32> to vector<8x32xf32>
    %210 = arith.mulf %200, %209 : vector<8x32xf32>
    %211 = vector.broadcast %158 : vector<1x32xf32> to vector<8x32xf32>
    %212 = arith.mulf %210, %211 : vector<8x32xf32>
    %213 = vector.broadcast %159 : vector<1x32xf32> to vector<8x32xf32>
    %214 = arith.addf %212, %213 : vector<8x32xf32>
    %c0_102 = arith.constant 0 : index
    %c0_103 = arith.constant 0 : index
    %c0_104 = arith.constant 0 : index
    %215 = vector.load %arg12[%c0_102, %c0_103, %c0_104] : memref<1x8x32xf32, #tpu.memory_space<vmem>>, vector<1x8x32xf32>
    %216 = vector.shape_cast %215 : vector<1x8x32xf32> to vector<8x32xf32>
    %217 = vector.shape_cast %214 : vector<8x32xf32> to vector<1x8x32xf32>
    tpu.vector_store %arg12[%c0_102, %c0_103, %c0_104], %217 {strides = array<i32>} : memref<1x8x32xf32, #tpu.memory_space<vmem>>, vector<1x8x32xf32>,
    return
  }
  func.func @transform_0(%arg0: i32) -> (i32, i32, i32) {
    %c0_i32 = arith.constant 0 : i32
    %c0_i32_0 = arith.constant 0 : i32
    %c0_i32_1 = arith.constant 0 : i32
    return %arg0, %c0_i32, %c0_i32_0 : i32, i32, i32
  }
  func.func @transform_1(%arg0: i32) -> (i32, i32, i32) {
    %c0_i32 = arith.constant 0 : i32
    %c0_i32_0 = arith.constant 0 : i32
    %c0_i32_1 = arith.constant 0 : i32
    return %arg0, %c0_i32, %c0_i32_0 : i32, i32, i32
  }
  func.func @transform_2(%arg0: i32) -> (i32, i32) {
    %c0_i32 = arith.constant 0 : i32
    %c0_i32_0 = arith.constant 0 : i32
    %c0_i32_1 = arith.constant 0 : i32
    return %c0_i32, %c0_i32_0 : i32, i32
  }
  func.func @transform_3(%arg0: i32) -> (i32, i32) {
    %c0_i32 = arith.constant 0 : i32
    %c0_i32_0 = arith.constant 0 : i32
    %c0_i32_1 = arith.constant 0 : i32
    return %c0_i32, %c0_i32_0 : i32, i32
  }
  func.func @transform_4(%arg0: i32) -> (i32, i32, i32) {
    %c0_i32 = arith.constant 0 : i32
    %c0_i32_0 = arith.constant 0 : i32
    %c0_i32_1 = arith.constant 0 : i32
    %c0_i32_2 = arith.constant 0 : i32
    return %c0_i32, %c0_i32_0, %c0_i32_1 : i32, i32, i32
  }
  func.func @transform_5(%arg0: i32) -> (i32, i32, i32) {
    %c0_i32 = arith.constant 0 : i32
    %c0_i32_0 = arith.constant 0 : i32
    %c0_i32_1 = arith.constant 0 : i32
    %c0_i32_2 = arith.constant 0 : i32
    return %c0_i32, %c0_i32_0, %c0_i32_1 : i32, i32, i32
  }
  func.func @transform_6(%arg0: i32) -> (i32, i32) {
    %c0_i32 = arith.constant 0 : i32
    %c0_i32_0 = arith.constant 0 : i32
    %c0_i32_1 = arith.constant 0 : i32
    return %c0_i32, %c0_i32_0 : i32, i32
  }
  func.func @transform_7(%arg0: i32) -> (i32, i32) {
    %c0_i32 = arith.constant 0 : i32
    %c0_i32_0 = arith.constant 0 : i32
    %c0_i32_1 = arith.constant 0 : i32
    return %c0_i32, %c0_i32_0 : i32, i32
  }
  func.func @transform_8(%arg0: i32) -> (i32, i32) {
    %c0_i32 = arith.constant 0 : i32
    %c0_i32_0 = arith.constant 0 : i32
    %c0_i32_1 = arith.constant 0 : i32
    return %c0_i32, %c0_i32_0 : i32, i32
  }
  func.func @transform_9(%arg0: i32) -> (i32, i32) {
    %c0_i32 = arith.constant 0 : i32
    %c0_i32_0 = arith.constant 0 : i32
    %c0_i32_1 = arith.constant 0 : i32
    return %c0_i32, %c0_i32_0 : i32, i32
  }
  func.func @transform_10(%arg0: i32) -> (i32, i32, i32, i32) {
    %c0_i32 = arith.constant 0 : i32
    %c0_i32_0 = arith.constant 0 : i32
    %c0_i32_1 = arith.constant 0 : i32
    %c0_i32_2 = arith.constant 0 : i32
    return %arg0, %c0_i32, %c0_i32_0, %c0_i32_1 : i32, i32, i32, i32
  }
  func.func @transform_11(%arg0: i32) -> (i32, i32, i32) {
    %c0_i32 = arith.constant 0 : i32
    %c0_i32_0 = arith.constant 0 : i32
    %c0_i32_1 = arith.constant 0 : i32
    return %arg0, %c0_i32, %c0_i32_0 : i32, i32, i32
  }
}

</mosaic_0001>

<bundles_post_ra>
// kernel: encoder_layer_forward.1
= control target key start
LH: loop header
LB: loop body
LE: loop exit
PB: predicated region body
PF: predicated region fallthrough
CT: control target
= control target key end

     0   :  { %s3324_s0 = inlined_call_operand.vmem [shape: f32[2,8,32], index: 0, kind: input, shape index: {}]   ;;  %s3325_s1 = inlined_call_operand.vmem [shape: f32[2,8,8], index: 1, kind: input, shape index: {}]   ;;  %s3326_s2 = inlined_call_operand.vmem [shape: bf16[32,96], index: 2, kind: input, shape index: {}]   ;;  %s3327_s3 = inlined_call_operand.vmem [shape: f32[1,96], index: 3, kind: input, shape index: {}]   ;;  %s3328_s4 = inlined_call_operand.vmem [shape: bf16[4,8,32], index: 4, kind: input, shape index: {}]   ;;  %s3329_s5 = inlined_call_operand.vmem [shape: bf16[4,8,32], index: 5, kind: input, shape index: {}]   ;;  %s3330_s6 = inlined_call_operand.vmem [shape: f32[8,32], index: 6, kind: input, shape index: {}]   ;;  %s3331_s7 = inlined_call_operand.vmem [shape: bf16[32,1024], index: 7, kind: input, shape index: {}]   ;;  %s3332_s8 = inlined_call_operand.vmem [shape: f32[1,1024], index: 8, kind: input, shape index: {}]   ;;  %s3333_s9 = inlined_call_operand.vmem [shape: bf16[1024,32], index: 9, kind: input, shape index: {}]   ;;  %s3334_s10 = inlined_call_operand.hbm [shape: f32[2,4,8,8], index: 10, kind: output, shape index: {0}]   ;;  %s3335_s11 = inlined_call_operand.hbm [shape: f32[2,8,32], index: 11, kind: output, shape index: {1}]  }
   0x1   :  { %3336 = sst [smem:[#allocation9_spill]] %s3324_s0 }
   0x2   :  { %3337 = sst [smem:[#allocation10_spill]] %s3325_s1 }
   0x3   :  { %3338 = sst [smem:[#allocation11_spill]] %s3326_s2 }
   0x4   :  { %3339 = sst [smem:[#allocation12_spill]] %s3327_s3 }
   0x5   :  { %3340 = sst [smem:[#allocation13_spill]] %s3328_s4 }
   0x6   :  { %3341 = sst [smem:[#allocation14_spill]] %s3329_s5 }
   0x7   :  { %17 = vsyncpa [#allocation4], 0 }
   0x8   :  { %19 = vsyncpa [#allocation4 + $0x1], 0 }
   0x9   :  { %20 = vsyncpa [#allocation6], 0 }
   0xa   :  { %22 = vsyncpa [#allocation6 + $0x1], 0  ;;  %s2772_s17 = smov 0   ;;  %s2774_s18 = smov 0  }
   0xb   :  { %s2776_s19 = smov 0   ;;  %s2778_s20 = smov 0  }
   0xc LB: > { %s2793_s21 = sadd.s32 4294967295, %s2696_s20   ;;  %s2053_s22 = sadd.s32 4294967294, %s2696_s20   ;;  %s2696_s20 = sphi %s2778_s20, %s3353_s20   ;;  %s2692_s19 = sphi %s2776_s19, %s3352_s19   ;;  %s2688_s18 = sphi %s2774_s18, %s3351_s18   ;;  %s2684_s17 = sphi %s2772_s17, %s3350_s17  }
   0xd   : > { %s2797_s23 = sadd.s32 1, %s2696_s20   ;;  %s255_s24 = sadd.s32 1, %s2692_s19 }
   0xe   : > { %s252_s25 = ssub.s32 %s2696_s20, %s2797_s23  ;;  %p265_p0 = scmp.ne.s32.totalorder %s2692_s19, %s2688_s18 }
   0xf   : > { %p253_p1 = scmp.eq.s32.totalorder %s252_s25, 0  ;;  %p266_p2 = scmp.eq.s32.totalorder %s2793_s21, 1 }
  0x10   : > { %p271_p3 = scmp.ne.s32.totalorder %s2688_s18, %s2684_s17  ;;  %p272_p4 = scmp.eq.s32.totalorder %s2053_s22, 1 }
  0x11   : > { %s2808_s26 = scalar_select %p253_p1, %s2692_s19, %s255_s24  }
  0x12   : > { %p2810_p5 = por %p266_p2, %p265_p0  ;;  %p2814_p6 = por %p272_p4, %p271_p3 }
  0x13   : > { %p2056_p7 = scmp.ge.s32.totalorder %s2696_s20, 1  ;;  %p354_p8 = scmp.lt.s32.totalorder %s2696_s20, 3 }
  0x15   : > { %p355_p9 = pnand %p2056_p7, %p354_p8 }
  0x16   : > { %s3344_s2 = sld [smem:[#allocation11_spill]] (!%p355_p9)  ;;  %p402_p10 = scmp.lt.s32.totalorder (!%p355_p9), %s2793_s21, 1 }
  0x17   : > { %358 = sbr.rel (%p355_p9) target bundleno = 2692 (0xa84), region = 60  ;;  %s3345_s0 = sld [smem:[#allocation9_spill]] (!%p355_p9) }
  0x18   : > { %s3346_s3 = sld [smem:[#allocation12_spill]] (!%p355_p9)  ;;  %s2698_s30 = smov (!%p355_p9), 80  }
  0x19   : > { %s2699_s12 = smov (!%p355_p9), 96   ;;  %s2700_s13 = smov (!%p355_p9), 64  }
  0x1a   : > { %s2701_s16 = smov (!%p355_p9), 72   ;;  %s3347_s1 = sld [smem:[#allocation10_spill]] (!%p355_p9) }
  0x1b   : > { %s2702_s29 = smov (!%p355_p9), 88   ;;  %s2706_s22 = smov (!%p355_p9), 56  }
  0x1c   : > { %v2431_v0 = vld [vmem:[%s3344_s2 + $0x8] sm:$0xff]  ;;  %v2430_v1 = vld [vmem:[%s3344_s2] sm:$0xff]  ;;  %s2828_s14 = scalar_select %p402_p10, %s2793_s21, 1  ;;  %vm434_vm0 = vcmask 261120   ;;  %vm493_vm1 = vcmask 1043456   ;;  %vm489_vm2 = vcmask 64512  }
  0x1d   : > { %444 = vmatpush.bf16.msra.mxu0 %v2431_v0  ;;  %s3348_s5 = sld [smem:[#allocation14_spill]]  ;;  %s2512_s2 = sshll.u32 %s2793_s21, 5 }
  0x1e   : > { %s2059_s15 = sshll.u32 %s2828_s14, 3  ;;  %v2579_v4 = vld [vmem:[%s3346_s3] ss:$0 sm:$0xff]  ;;  %s2704_s14 = smov 112  }
  0x1f   : > { %s405_s24 = scalar_lea.vmem %s3345_s0, %s2059_s15  ;;  %s3349_s4 = sld [smem:[#allocation13_spill]] }
  0x20   : > { %v2836_v2 = vld [vmem:[%s405_s24] sm:$0xff]  ;;  %s409_s25 = scalar_lea.vmem %s3347_s1, %s2059_s15  ;;  %s2705_s15 = smov 104  }
  0x21   : > { %445 = vmatpush.bf16.msra.mxu0 %v2430_v1  ;;  %v412_v3 = vpack.c.bf16 %v2836_v2, %v2836_v2  ;;  %v2856_v17 = vld [vmem:[%s409_s25] sm:$0xff]  ;;  %s2707_s24 = smov 40   ;;  %s2708_s25 = smov 48  }
  0x22   : > { %s2622_s3 = scalar_lea.hbm %s3334_s10, 64 }
  0x24   : > { %2069 = vmatmul.msk.bf16.vlgmr.msra.gmra.mxu0 %vm434_vm0, %v412_v3 }
  0xa1   : > { %v447_v5 = vpop.f32.mrf.mxu0 }
  0xa2   : > { %v448_v6 = vadd.f32 %v2579_v4, %v447_v5 }
  0xa4   : > { %643 = vrot.lane.b32.xlu2 %v448_v6, %s2698_s30  ;;  %453 = vrot.lane.b32.xlu0 %v448_v6, %s2699_s12  ;;  %v2844_v8 = vpack.c.bf16 %v448_v6, %v448_v6  ;;  %s2703_s30 = smov 120   ;;  %s2865_s12 = sand.u32 1, %s2688_s18  }
  0xa9   : > { %v449_v7 = vpop.f32.mrf.mxu0 }
  0xac   : > { %526 = vrot.lane.b32.xlu2 %v2844_v8, %s2700_s13  ;;  %s2057_s13 = sshll.u32 %s2865_s12, 5 }
  0xb4   : > { %738 = vrot.lane.b32.xlu2 %v448_v6, %s2701_s16  ;;  %s2868_s16 = scalar_lea.vmem [#allocation3], %s2057_s13  ;;  %s1912_s13 = scalar_lea.sflag [#allocation4], %s2865_s12 }
  0xfe   : > { %v644_v9 = vpop.permute.xlu2 %643 }
 0x106   : > { %v527_v10 = vpop.permute.xlu2 %526 }
 0x107   : > { %v532_v11 = vsel %vm493_vm1, %v527_v10, 0 }
 0x108   : > { %541 = vmatpush.bf16.msra.mxu2 %v532_v11 }
 0x10e   : > { %v739_v22 = vpop.permute.xlu2 %738 }
 0x116   : > { %v454_v12 = vpop.permute.xlu0 %453 }
 0x117   : > { %456 = vxpose.xlu0.b32.start.end [1/1] (short) (narrow) %v454_v12, 8 }
 0x1bb   : > { %v472_v13 = vpop.trf.xlu0 }
 0x1bc   : > { %v488_v14 = vpack.c.bf16 %v472_v13, %v472_v13 }
 0x1be   : > { %v495_v15 = vsel %vm493_vm1, %v488_v14, 0 }
 0x1bf   : > { %504 = vmatpush.bf16.msra.mxu1 %v495_v15 }
 0x1c2   : > { %2070 = vmatmul.msk.bf16.vlgmr.msra.gmra.mxu1 %vm489_vm2, %v2844_v8 }
 0x23f   : > { %v506_v16 = vpop.f32.mrf.mxu1 }
 0x240   : > { %v510_v18 = vmul.f32 0.35355338, %v506_v16 }
 0x242   : > { %v511_v19 = vadd.f32 %v510_v18, %v2856_v17 }
 0x244   : > { %v512_v20 = vsel %vm489_vm2, %v511_v19, -inf }
 0x245   : > { %513 = vmax.xlane.f32.xlu1 %v512_v20 }
 0x247   : > { %v508_v21 = vpop.f32.mrf.mxu1 }
 0x25e   : > { %548 = vrot.lane.b32.xlu1 %v448_v6, %s2702_s29 }
 0x266   : > { %584 = vrot.lane.b32.xlu1 %v2844_v8, %s2703_s30  ;;  %s1928_s30 = scalar_lea.hbm %s3334_s10, %s2512_s2 }
 0x26e   : > { %679 = vrot.lane.b32.xlu1 %v2844_v8, %s2704_s14  ;;  %s1929_s14 = sshll.u32 %s2868_s16, 4  ;;  %s1930_s14 = int_to_ptr.vmem [resolvable:$true] %s1929_s14 }
 0x2a3   : > { %741 = vxpose.xlu1.b32.start.end [1/1] (short) (narrow) %v739_v22, 8 }
 0x2b8   : > { %v514_v23 = vpop.xlane.xlu1 %513 }
 0x2b9   : > { %v515_v24 = vsub.f32 %v511_v19, %v514_v23 }
 0x2bb   : > { %v516_v25 = vmul.f32 1.442695, %v515_v24 }
 0x2bd   : > { %2580 = vpow2.f32 %v516_v25 }
 0x2c3   : > { %v2581_v26 = vpop.eup %2580 }
 0x2c4   : > { %v518_v27 = vsel %vm489_vm2, %v2581_v26, 0.0 }
 0x2c5   : > { %519 = vadd.xlane.f32.xlu2 %v518_v27 }
 0x2d0   : > { %v549_v28 = vpop.permute.xlu1 %548 }
 0x2d1   : > { %v2572_v29 = vpack.i.bf16 %v644_v9, %v549_v28 }
 0x2d3   : > { %2573 = vxpose.xlu0.b32.start.end [1/1] (short) (narrow) %v2572_v29, 8 }
 0x2d8   : > { %v585_v30 = vpop.permute.xlu1 %584 }
 0x2dd   : > { %774 = vrot.lane.b32.xlu2 %v2844_v8, %s2705_s15  ;;  %s1931_s15 = sshll.u32 %s1928_s30, 4  ;;  %s1932_s15 = int_to_ptr.hbm [resolvable:$true] %s1931_s15 }
 0x2e0   : > { %v680_v33 = vpop.permute.xlu1 %679 }
 0x338   : > { %v520_v31 = vpop.xlane.xlu2 %519 }
 0x339   : > { %2582 = vrcp.f32 %v520_v31 }
 0x33f   : > { %v2583_v32 = vpop.eup %2582 }
 0x340   : > { %v522_v34 = vmul.f32 %v2583_v32, %v2581_v26  ;;  %v775_v39 = vpop.permute.xlu2 %774 }
 0x342   : > { %523 = vst.msk [vmem:[%s2868_s16] sm:$0xff] %vm489_vm2, %v522_v34  ;;  %v524_v35 = vpack.c.bf16 %v522_v34, %v522_v34  ;;  %v2084_v34 = vld [vmem:[%s3348_s5 + $0x4] sm:$0xf] }
 0x344   : > { %2071 = vmatmul.msk.bf16.vlgmr.msra.gmra.mxu2 %vm489_vm2, %v524_v35  ;;  %v883_v35 = vsel %vm493_vm1, %v2084_v34, 0  ;;  %v2129_v34 = vld [vmem:[%s3331_s7 + $0x40] sm:$0xf] }
 0x347   : > { %v757_v36 = vpop.trf.xlu1 }
 0x348   : > { %v773_v37 = vpack.c.bf16 %v757_v36, %v757_v36 }
 0x34a   : > { %v780_v38 = vsel %vm493_vm1, %v773_v37, 0 }
 0x34b   : > { %789 = vmatpush.bf16.msrb.mxu0 %v780_v38 }
 0x34e   : > { %2078 = vmatmul.msk.bf16.vlgmr.msrb.gmra.mxu0 %vm489_vm2, %v775_v39 }
 0x34f   : > { %892 = vmatpush.bf16.msra.mxu0 %v883_v35  ;;  %v2444_v35 = vld [vmem:[%s3331_s7 + $0x5c] sm:$0xf0] }
 0x377   : > { %v2574_v40 = vpop.trf.xlu0 }
 0x378   : > { %v2575_v41 = vunpack.i.l.bf16 %v2574_v40  ;;  %v2578_v42 = vunpack.i.h.bf16 %v2574_v40 }
 0x37a   : > { %v583_v43 = vpack.c.bf16 %v2575_v41, %v2575_v41  ;;  %v678_v44 = vpack.c.bf16 %v2578_v42, %v2578_v42 }
 0x37c   : > { %v590_v45 = vsel %vm493_vm1, %v583_v43, 0  ;;  %v685_v46 = vsel %vm493_vm1, %v678_v44, 0 }
 0x37d   : > { %599 = vmatpush.bf16.msra.mxu3 %v590_v45  ;;  %694 = vmatpush.bf16.msrb.mxu2 %v685_v46 }
 0x380   : > { %2072 = vmatmul.msk.bf16.vlgmr.msra.gmra.mxu3 %vm489_vm2, %v585_v30  ;;  %2075 = vmatmul.msk.bf16.vlgmr.msrb.gmra.mxu2 %vm489_vm2, %v680_v33 }
 0x3c7   : > { %v543_v47 = vpop.f32.mrf.mxu2 }
 0x3c8   : > { %547 = vst.msk [vmem:[#allocation2] sm:$0xff] %vm489_vm2, %v543_v47 }
 0x3cb   : > { %v791_v48 = vpop.f32.mrf.mxu0 }
 0x3cc   : > { %v795_v49 = vmul.f32 0.35355338, %v791_v48  ;;  %v839_v48 = vld [vmem:[%s3349_s4] sm:$0xf] }
 0x3ce   : > { %v796_v50 = vadd.f32 %v795_v49, %v2856_v17  ;;  %v2082_v49 = vld [vmem:[%s3349_s4 + $0x4] sm:$0xf] }
 0x3cf   : > { %v545_v51 = vpop.f32.mrf.mxu2  ;;  %v833_v46 = vld [vmem:[#allocation2] sm:$0xff] }
 0x3d0   : > { %v797_v52 = vsel %vm489_vm2, %v796_v50, -inf  ;;  %v857_v51 = vld [vmem:[%s3348_s5] sm:$0xf] }
 0x3d1   : > { %798 = vmax.xlane.f32.xlu2 %v797_v52  ;;  %v902_v52 = vsel %vm493_vm1, %v857_v51, 0  ;;  %v2105_v51 = vld [vmem:[%s3331_s7 + $0x8] sm:$0xf] }
 0x3d3   : > { %v793_v53 = vpop.f32.mrf.mxu0 }
 0x3d4   : > { %v2089_v53 = vld [vmem:[%s3348_s5 + $0x8] sm:$0xf] }
 0x403   : > { %v601_v54 = vpop.f32.mrf.mxu3  ;;  %v696_v55 = vpop.f32.mrf.mxu2 }
 0x404   : > { %v605_v56 = vmul.f32 0.35355338, %v601_v54  ;;  %v700_v57 = vmul.f32 0.35355338, %v696_v55  ;;  %v942_v54 = vsel %vm493_vm1, %v2089_v53, 0 }
 0x406   : > { %v606_v58 = vadd.f32 %v605_v56, %v2856_v17  ;;  %v701_v59 = vadd.f32 %v700_v57, %v2856_v17 }
 0x408   : > { %v607_v60 = vsel %vm489_vm2, %v606_v58, -inf  ;;  %v702_v61 = vsel %vm489_vm2, %v701_v59, -inf }
 0x409   : > { %608 = vmax.xlane.f32.xlu0 %v607_v60  ;;  %703 = vmax.xlane.f32.xlu2 %v702_v61 }
 0x40b   : > { %v603_v62 = vpop.f32.mrf.mxu3  ;;  %v698_v63 = vpop.f32.mrf.mxu2 }
 0x40c   : > { %v2091_v62 = vld [vmem:[%s3349_s4 + $0xc] sm:$0xf] }
 0x421   : > { %621 = vrot.lane.b32.xlu2 %v2844_v8, %s2706_s22  ;;  %s2616_s22 = sshra.s32 %s1932_s15, 4  ;;  %s2617_s22 = int_to_ptr.hbm [resolvable:$true] %s2616_s22 }
 0x422   : > { %p2623_p0 = scmp.lt.s32.totalorder %s2617_s22, %s3334_s10 }
 0x444   : > { %v799_v0 = vpop.xlane.xlu2 %798 }
 0x445   : > { %v800_v1 = vsub.f32 %v796_v50, %v799_v0  ;;  %v2087_v50 = vld [vmem:[%s3349_s4 + $0x8] sm:$0xf] }
 0x447   : > { %v801_v3 = vmul.f32 1.442695, %v800_v1  ;;  %v2093_v1 = vld [vmem:[%s3348_s5 + $0xc] sm:$0xf] }
 0x449   : > { %2584 = vpow2.f32 %v801_v3  ;;  %v983_v3 = vsel %vm493_vm1, %v2093_v1, 0  ;;  %v2153_v1 = vld [vmem:[%s3331_s7 + $0x58] sm:$0xf] }
 0x44f   : > { %v2585_v4 = vpop.eup %2584 }
 0x450   : > { %v803_v5 = vsel %vm489_vm2, %v2585_v4, 0.0 }
 0x451   : > { %804 = vadd.xlane.f32.xlu0 %v803_v5 }
 0x465   : > { %811 = vrot.lane.b32.xlu0 %v2844_v8, %s2707_s24  ;;  %s2618_s24 = scalar_lea.hbm %s2617_s22, 32 }
 0x466   : > { %p2619_p11 = scmp.ne.s32.totalorder %s2617_s22, %s2618_s24  ;;  %p2624_p1 = scmp.lt.s32.totalorder %s2622_s3, %s2618_s24 }
 0x468   : > { %p2620_p12 = pnand %p2619_p11, %p2810_p5  ;;  %p2625_p2 = por %p2624_p1, %p2623_p0 }
 0x46a   : > { %p2621_p13 = pneg %p2620_p12 }
 0x46c   : > { %p2626_p3 = pnand %p2625_p2, %p2621_p13 }
 0x47c   : > { %v609_v6 = vpop.xlane.xlu0 %608  ;;  %v704_v7 = vpop.xlane.xlu2 %703 }
 0x47d   : > { %v610_v9 = vsub.f32 %v606_v58, %v609_v6  ;;  %v705_v10 = vsub.f32 %v701_v59, %v704_v7 }
 0x47f   : > { %v611_v11 = vmul.f32 1.442695, %v610_v9  ;;  %v706_v12 = vmul.f32 1.442695, %v705_v10 }
 0x481   : > { %2586 = vpow2.f32 %v611_v11 }
 0x482   : > { %2588 = vpow2.f32 %v706_v12 }
 0x484   : > { %v622_v13 = vpop.permute.xlu2 %621 }
 0x485   : > { %v627_v14 = vsel %vm493_vm1, %v622_v13, 0 }
 0x486   : > { %636 = vmatpush.bf16.msrb.mxu1 %v627_v14 }
 0x487   : > { %v2587_v15 = vpop.eup %2586 }
 0x488   : > { %v2589_v16 = vpop.eup %2588  ;;  %v613_v17 = vsel %vm489_vm2, %v2587_v15, 0.0 }
 0x489   : > { %614 = vadd.xlane.f32.xlu1 %v613_v17  ;;  %v708_v18 = vsel %vm489_vm2, %v2589_v16, 0.0 }
 0x48a   : > { %709 = vadd.xlane.f32.xlu2 %v708_v18 }
 0x4a2   : > { %716 = vrot.lane.b32.xlu2 %v2844_v8, %s2708_s25 }
 0x4c4   : > { %v805_v19 = vpop.xlane.xlu0 %804 }
 0x4c5   : > { %2590 = vrcp.f32 %v805_v19 }
 0x4cb   : > { %v2591_v20 = vpop.eup %2590 }
 0x4cc   : > { %v807_v21 = vmul.f32 %v2591_v20, %v2585_v4 }
 0x4ce   : > { %2079 = vst.msk [vmem:[%s2868_s16 + $0x18] sm:$0xff] %vm489_vm2, %v807_v21  ;;  %v810_v33 = vpack.c.bf16 %v807_v21, %v807_v21 }
 0x4d7   : > { %v812_v22 = vpop.permute.xlu0 %811 }
 0x4d8   : > { %v817_v23 = vsel %vm493_vm1, %v812_v22, 0 }
 0x4d9   : > { %826 = vmatpush.bf16.msra.mxu1 %v817_v23 }
 0x4fc   : > { %v615_v24 = vpop.xlane.xlu1 %614 }
 0x4fd   : > { %v710_v25 = vpop.xlane.xlu2 %709  ;;  %2592 = vrcp.f32 %v615_v24  ;;  %v2709_v24 = vmov 32.0  }
 0x4fe   : > { %2594 = vrcp.f32 %v710_v25 }
 0x4ff   : > { %2596 = vrcp.f32 %v2709_v24 }
 0x503   : > { %v2593_v26 = vpop.eup %2592 }
 0x504   : > { %v2595_v27 = vpop.eup %2594  ;;  %v617_v28 = vmul.f32 %v2593_v26, %v2587_v15 }
 0x505   : > { %v712_v8 = vmul.f32 %v2595_v27, %v2589_v16  ;;  %v717_v29 = vpop.permute.xlu2 %716  ;;  %v2946_v16 = vld [vmem:[%s3330_s6] sm:$0xff]  ;;  %v2597_v25 = vpop.eup %2596 }
 0x506   : > { %2073 = vst.msk [vmem:[%s2868_s16 + $0x8] sm:$0xff] %vm489_vm2, %v617_v28  ;;  %v722_v30 = vsel %vm493_vm1, %v717_v29, 0  ;;  %v620_v31 = vpack.c.bf16 %v617_v28, %v617_v28  ;;  %v1000_v17 = vperm.slane %v2946_v16, 0  ;;  %v1007_v26 = vmul.f32 32.0, %v2597_v25 }
 0x507   : > { %2076 = vst.msk [vmem:[%s2868_s16 + $0x10] sm:$0xff] %vm489_vm2, %v712_v8  ;;  %731 = vmatpush.bf16.msrb.mxu3 %v722_v30  ;;  %v715_v32 = vpack.c.bf16 %v712_v8, %v712_v8  ;;  %vm1011_vm3 = vweird.f32 %v2597_v25 }
 0x508   : > { %2074 = vmatmul.msk.bf16.vlgmr.msrb.gmra.mxu1 %vm489_vm2, %v620_v31  ;;  %v1008_v27 = vsub.f32 1.0, %v1007_v26 }
 0x509   : > { %911 = vmatpush.bf16.msrb.mxu1 %v902_v52  ;;  %v2437_v52 = vld [vmem:[%s3331_s7 + $0x24] sm:$0xf0] }
 0x50a   : > { %2077 = vmatmul.msk.bf16.vlgmr.msrb.gmra.mxu3 %vm489_vm2, %v715_v32  ;;  %v1009_v28 = vmul.f32 %v2597_v25, %v1008_v27 }
 0x50c   : > { %v1010_v8 = vadd.f32 %v2597_v25, %v1009_v28 }
 0x50e   : > { %v2951_v29 = vsel %vm1011_vm3, %v2597_v25, %v1010_v8 }
 0x518   : > { %2080 = vmatmul.msk.bf16.vlgmr.msra.gmra.mxu1 %vm489_vm2, %v810_v33 }
 0x519   : > { %992 = vmatpush.bf16.msra.mxu1 %v983_v3  ;;  %v2447_v3 = vld [vmem:[%s3331_s7 + $0x74] sm:$0xf0] }
 0x585   : > { %v638_v36 = vpop.f32.mrf.mxu1 }
 0x586   : > { %642 = vst.msk [vmem:[#allocation2 + $0x8] sm:$0xff] %vm489_vm2, %v638_v36  ;;  %v2440_v36 = vld [vmem:[%s3331_s7 + $0x44] sm:$0xf] }
 0x58d   : > { %v733_v37 = vpop.f32.mrf.mxu3  ;;  %v640_v38 = vpop.f32.mrf.mxu1  ;;  %v834_v45 = vld [vmem:[#allocation2 + $0x8] sm:$0xff] }
 0x58e   : > { %737 = vst.msk [vmem:[#allocation2 + $0x10] sm:$0xff] %vm489_vm2, %v733_v37  ;;  %v837_v47 = vpack.c.bf16 %v834_v45, %v833_v46  ;;  %v2130_v37 = vor.u32 %v2444_v35, %v2129_v34  ;;  %v2131_v38 = vld [vmem:[%s3331_s7 + $0x60] sm:$0xf0]  ;;  %v2097_v46 = vld [vmem:[%s3331_s7] sm:$0xf] }
 0x595   : > { %v735_v39 = vpop.f32.mrf.mxu3  ;;  %v828_v40 = vpop.f32.mrf.mxu1  ;;  %v835_v42 = vld [vmem:[#allocation2 + $0x10] sm:$0xff] }
 0x596   : > { %832 = vst.msk [vmem:[#allocation2 + $0x18] sm:$0xff] %vm489_vm2, %v828_v40  ;;  %v2137_v39 = vld [vmem:[%s3331_s7 + $0x48] sm:$0xf] }
 0x597   : > { %v2445_v40 = vld [vmem:[%s3331_s7 + $0x64] sm:$0xf0] }
 0x59d   : > { %v830_v41 = vpop.f32.mrf.mxu1  ;;  %v836_v43 = vld [vmem:[#allocation2 + $0x18] sm:$0xff] }
 0x59e   : > { %v838_v44 = vpack.c.bf16 %v836_v43, %v835_v42  ;;  %v2134_v41 = vor.u32 %v2440_v36, %v2131_v38  ;;  %v2138_v42 = vor.u32 %v2445_v40, %v2137_v39  ;;  %v2441_v43 = vld [vmem:[%s3331_s7 + $0x4c] sm:$0xf]  ;;  %v2479_v38 = vld [vmem:[%s3333_s9 + $0xf8] sm:$0xff]  ;;  %v2470_v40 = vld [vmem:[%s3333_s9 + $0xb0] sm:$0xff] }
 0x59f   : > { %v2455_v39 = vld [vmem:[%s3333_s9 + $0x38] sm:$0xff] }
 0x5a0   : > { %849 = vmatpush.bf16.msra.mxu2 %v838_v44  ;;  %869 = vmatpush.bf16.msra.mxu3 %v838_v44 }
 0x5a1   : > { %969 = vmatpush.bf16.msrb.mxu0 %v838_v44 }
 0x5a4   : > { %850 = vmatpush.bf16.msra.mxu2 %v837_v47  ;;  %870 = vmatpush.bf16.msra.mxu3 %v837_v47 }
 0x5a5   : > { %970 = vmatpush.bf16.msrb.mxu0 %v837_v47 }
 0x5a7   : > { %2081 = vmatmul.msk.bf16.vlgmr.msra.gmra.mxu2 %vm434_vm0, %v839_v48  ;;  %2083 = vmatmul.msk.bf16.vlgmr.msra.gmra.mxu3 %vm434_vm0, %v2082_v49  ;;  %v2432_v48 = vld [vmem:[%s3331_s7 + $0x4] sm:$0xf] }
 0x5a8   : > { %928 = vmatpush.bf16.msrb.mxu2 %v838_v44  ;;  %951 = vmatpush.bf16.msrb.mxu3 %v942_v54  ;;  %v2139_v44 = vld [vmem:[%s3331_s7 + $0x68] sm:$0xf0]  ;;  %v2106_v54 = vor.u32 %v2437_v52, %v2105_v51  ;;  %v2460_v51 = vld [vmem:[%s3333_s9 + $0x60] sm:$0xff]  ;;  %v2467_v52 = vld [vmem:[%s3333_s9 + $0x98] sm:$0xff] }
 0x5a9   : > { %v2142_v45 = vor.u32 %v2441_v43, %v2139_v44  ;;  %v2462_v43 = vld [vmem:[%s3333_s9 + $0x70] sm:$0xff]  ;;  %v2469_v44 = vld [vmem:[%s3333_s9 + $0xa8] sm:$0xff] }
 0x5ac   : > { %929 = vmatpush.bf16.msrb.mxu2 %v837_v47  ;;  %1173 = vmatpush.bf16.msra.mxu3 %v2134_v41  ;;  %v2436_v47 = vld [vmem:[%s3331_s7 + $0x1c] sm:$0xf0]  ;;  %v2478_v41 = vld [vmem:[%s3333_s9 + $0xf0] sm:$0xff] }
 0x5ad   : > { %v2098_v49 = vor.u32 %v2436_v47, %v2097_v46  ;;  %v2453_v46 = vld [vmem:[%s3333_s9 + $0x28] sm:$0xff] }
 0x5ae   : > { %v2461_v47 = vld [vmem:[%s3333_s9 + $0x68] sm:$0xff] }
 0x5b0   : > { %1160 = vmatpush.bf16.msra.mxu2 %v2130_v37  ;;  %v2471_v37 = vld [vmem:[%s3333_s9 + $0xb8] sm:$0xff] }
 0x5b4   : > { %1161 = vmatpush.bf16.msra.mxu2 %v2098_v49  ;;  %v2476_v49 = vld [vmem:[%s3333_s9 + $0xe0] sm:$0xff] }
 0x5b7   : > { %2088 = vmatmul.msk.bf16.vlgmr.msrb.gmra.mxu2 %vm434_vm0, %v2087_v50  ;;  %v2099_v50 = vld [vmem:[%s3331_s7 + $0x20] sm:$0xf0] }
 0x5b8   : > { %v2102_v53 = vor.u32 %v2432_v48, %v2099_v50  ;;  %v2468_v48 = vld [vmem:[%s3333_s9 + $0xa0] sm:$0xff] }
 0x5b9   : > { %v2452_v50 = vld [vmem:[%s3333_s9 + $0x20] sm:$0xff] }
 0x5ba   : > { %1174 = vmatpush.bf16.msra.mxu3 %v2102_v53  ;;  %v2475_v53 = vld [vmem:[%s3333_s9 + $0xd8] sm:$0xff] }
 0x62a   : > { %v852_v55 = vpop.f32.mrf.mxu2  ;;  %v872_v56 = vpop.f32.mrf.mxu3 }
 0x62b   : > { %v856_v57 = vpack.c.bf16 %v852_v55, %v852_v55  ;;  %v876_v58 = vpack.c.bf16 %v872_v56, %v872_v56  ;;  %v2433_v55 = vld [vmem:[%s3331_s7 + $0xc] sm:$0xf] }
 0x62c   : > { %v2107_v56 = vld [vmem:[%s3331_s7 + $0x28] sm:$0xf0] }
 0x62d   : > { %2085 = vmatmul.msk.bf16.vlgmr.msra.gmra.mxu0 %vm489_vm2, %v876_v58  ;;  %2086 = vmatmul.msk.bf16.vlgmr.msrb.gmra.mxu1 %vm489_vm2, %v856_v57  ;;  %v2110_v57 = vor.u32 %v2433_v55, %v2107_v56  ;;  %v2459_v55 = vld [vmem:[%s3333_s9 + $0x58] sm:$0xff]  ;;  %v2466_v56 = vld [vmem:[%s3333_s9 + $0x90] sm:$0xff] }
 0x62e   : > { %1186 = vmatpush.bf16.msra.mxu0 %v2138_v42  ;;  %1199 = vmatpush.bf16.msrb.mxu1 %v2142_v45  ;;  %v2454_v42 = vld [vmem:[%s3333_s9 + $0x30] sm:$0xff]  ;;  %v2477_v45 = vld [vmem:[%s3333_s9 + $0xe8] sm:$0xff] }
 0x632   : > { %v854_v59 = vpop.f32.mrf.mxu2  ;;  %v874_v60 = vpop.f32.mrf.mxu3  ;;  %1187 = vmatpush.bf16.msra.mxu0 %v2106_v54  ;;  %1200 = vmatpush.bf16.msrb.mxu1 %v2110_v57  ;;  %v2451_v54 = vld [vmem:[%s3333_s9 + $0x18] sm:$0xff]  ;;  %v2474_v57 = vld [vmem:[%s3333_s9 + $0xd0] sm:$0xff] }
 0x633   : > { %v2145_v59 = vld [vmem:[%s3331_s7 + $0x50] sm:$0xf] }
 0x634   : > { %v2446_v60 = vld [vmem:[%s3331_s7 + $0x6c] sm:$0xf0] }
 0x63a   : > { %v931_v61 = vpop.f32.mrf.mxu2 }
 0x63b   : > { %v935_v63 = vpack.c.bf16 %v931_v61, %v931_v61  ;;  %v2442_v61 = vld [vmem:[%s3331_s7 + $0x54] sm:$0xf] }
 0x63d   : > { %2090 = vmatmul.msk.bf16.vlgmr.msrb.gmra.mxu3 %vm489_vm2, %v935_v63  ;;  %2092 = vmatmul.msk.bf16.vlgmr.msrb.gmra.mxu0 %vm434_vm0, %v2091_v62  ;;  %v2146_v63 = vor.u32 %v2446_v60, %v2145_v59  ;;  %v2458_v59 = vld [vmem:[%s3333_s9 + $0x50] sm:$0xff]  ;;  %v2465_v60 = vld [vmem:[%s3333_s9 + $0x88] sm:$0xff] }
 0x63f   : > { %1212 = vmatpush.bf16.msrb.mxu2 %v2146_v63  ;;  %v2457_v63 = vld [vmem:[%s3333_s9 + $0x48] sm:$0xff] }
 0x642   : > { %v933_v0 = vpop.f32.mrf.mxu2 }
 0x643   : > { %v2147_v0 = vld [vmem:[%s3331_s7 + $0x70] sm:$0xf0] }
 0x6aa   : > { %v894_v4 = vpop.f32.mrf.mxu0  ;;  %v913_v5 = vpop.f32.mrf.mxu1 }
 0x6ab   : > { %v914_v6 = vadd.f32 %v913_v5, %v894_v4  ;;  %v2150_v4 = vor.u32 %v2442_v61, %v2147_v0  ;;  %v2154_v5 = vor.u32 %v2447_v3, %v2153_v1  ;;  %v2473_v61 = vld [vmem:[%s3333_s9 + $0xc8] sm:$0xff]  ;;  %v2464_v0 = vld [vmem:[%s3333_s9 + $0x80] sm:$0xff]  ;;  %v2503_v3 = vld [vmem:[%s3333_s9 + $0x1b8] sm:$0xff] }
 0x6ac   : > { %v2472_v1 = vld [vmem:[%s3333_s9 + $0xc0] sm:$0xff] }
 0x6ad   : > { %1225 = vmatpush.bf16.msrb.mxu3 %v2150_v4  ;;  %1238 = vmatpush.bf16.msrb.mxu0 %v2154_v5  ;;  %v2511_v4 = vld [vmem:[%s3333_s9 + $0x1f8] sm:$0xff]  ;;  %v2448_v5 = vld [vmem:[%s3333_s9] sm:$0xff] }
 0x6b2   : > { %v896_v7 = vpop.f32.mrf.mxu0  ;;  %v915_v9 = vpop.f32.mrf.mxu1 }
 0x6b3   : > { %v2155_v7 = vld [vmem:[%s3331_s7 + $0x78] sm:$0xf0]  ;;  %v2113_v9 = vld [vmem:[%s3331_s7 + $0x10] sm:$0xf] }
 0x6ba   : > { %v972_v10 = vpop.f32.mrf.mxu0 }
 0x6bb   : > { %v976_v11 = vpack.c.bf16 %v972_v10, %v972_v10 }
 0x6bd   : > { %2094 = vmatmul.msk.bf16.vlgmr.msra.gmra.mxu1 %vm489_vm2, %v976_v11 }
 0x6c0   : > { %v953_v12 = vpop.f32.mrf.mxu3 }
 0x6c1   : > { %v957_v13 = vadd.f32 %v953_v12, %v914_v6  ;;  %v2443_v6 = vld [vmem:[%s3331_s7 + $0x5c] sm:$0xf]  ;;  %v2438_v12 = vld [vmem:[%s3331_s7 + $0x2c] sm:$0xf0] }
 0x6c2   : > { %v974_v14 = vpop.f32.mrf.mxu0  ;;  %v2158_v11 = vor.u32 %v2443_v6, %v2155_v7  ;;  %v2456_v6 = vld [vmem:[%s3333_s9 + $0x40] sm:$0xff]  ;;  %v2487_v7 = vld [vmem:[%s3333_s9 + $0x138] sm:$0xff] }
 0x6c3   : > { %v2114_v14 = vor.u32 %v2438_v12, %v2113_v9  ;;  %v2495_v9 = vld [vmem:[%s3333_s9 + $0x178] sm:$0xff]  ;;  %v2501_v12 = vld [vmem:[%s3333_s9 + $0x1a8] sm:$0xff] }
 0x6c4   : > { %1251 = vmatpush.bf16.msra.mxu1 %v2158_v11  ;;  %v2510_v11 = vld [vmem:[%s3333_s9 + $0x1f0] sm:$0xff] }
 0x6c5   : > { %1213 = vmatpush.bf16.msrb.mxu2 %v2114_v14  ;;  %v2486_v14 = vld [vmem:[%s3333_s9 + $0x130] sm:$0xff] }
 0x6c8   : > { %v955_v15 = vpop.f32.mrf.mxu3 }
 0x6c9   : > { %v2115_v15 = vld [vmem:[%s3331_s7 + $0x30] sm:$0xf0] }
 0x73a   : > { %v994_v18 = vpop.f32.mrf.mxu1 }
 0x73b   : > { %v998_v19 = vadd.f32 %v994_v18, %v957_v13  ;;  %v2434_v13 = vld [vmem:[%s3331_s7 + $0x14] sm:$0xf]  ;;  %v2439_v18 = vld [vmem:[%s3331_s7 + $0x34] sm:$0xf0] }
 0x73d   : > { %v1001_v20 = vadd.f32 %v1000_v17, %v998_v19  ;;  %v2121_v17 = vld [vmem:[%s3331_s7 + $0x18] sm:$0xf]  ;;  %v2118_v19 = vor.u32 %v2434_v13, %v2115_v15  ;;  %v2509_v13 = vld [vmem:[%s3333_s9 + $0x1e8] sm:$0xff]  ;;  %v2494_v15 = vld [vmem:[%s3333_s9 + $0x170] sm:$0xff] }
 0x73f   : > { %v1002_v21 = vadd.f32 %v1001_v20, %v2836_v2  ;;  %v2122_v20 = vor.u32 %v2439_v18, %v2121_v17  ;;  %1226 = vmatpush.bf16.msrb.mxu3 %v2118_v19  ;;  %v2500_v17 = vld [vmem:[%s3333_s9 + $0x1a0] sm:$0xff]  ;;  %v2485_v19 = vld [vmem:[%s3333_s9 + $0x128] sm:$0xff] }
 0x740   : > { %v2508_v18 = vld [vmem:[%s3333_s9 + $0x1e0] sm:$0xff] }
 0x741   : > { %v1003_v22 = vsel %vm434_vm0, %v1002_v21, 0.0  ;;  %1239 = vmatpush.bf16.msrb.mxu0 %v2122_v20  ;;  %v2493_v20 = vld [vmem:[%s3333_s9 + $0x168] sm:$0xff] }
 0x742   : > { %1004 = vadd.xlane.f32.xlu0 %v1003_v22  ;;  %v996_v23 = vpop.f32.mrf.mxu1  ;;  %v2123_v22 = vld [vmem:[%s3331_s7 + $0x38] sm:$0xf0] }
 0x7b5   : > { %v1005_v30 = vpop.xlane.xlu0 %1004 }
 0x7b6   : > { %v1013_v31 = vmul.f32 %v2951_v29, %v1005_v30  ;;  %v1032_v30 = vperm.slane %v2946_v16, 1 }
 0x7b8   : > { %v2954_v32 = vsub.f32 %v1002_v21, %v1013_v31  ;;  %v2435_v21 = vld [vmem:[%s3331_s7 + $0x1c] sm:$0xf] }
 0x7b9   : > { %v2126_v23 = vor.u32 %v2435_v21, %v2123_v22  ;;  %v2499_v21 = vld [vmem:[%s3333_s9 + $0x198] sm:$0xff] }
 0x7ba   : > { %v1015_v2 = vmul.f32 %v2954_v32, %v2954_v32  ;;  %v2507_v22 = vld [vmem:[%s3333_s9 + $0x1d8] sm:$0xff] }
 0x7bb   : > { %1252 = vmatpush.bf16.msra.mxu1 %v2126_v23  ;;  %v2484_v23 = vld [vmem:[%s3333_s9 + $0x120] sm:$0xff] }
 0x7bc   : > { %v1016_v33 = vsel %vm434_vm0, %v1015_v2, 0.0  ;;  %v1034_v2 = vperm.slane %v2946_v16, 2 }
 0x7bd   : > { %1017 = vadd.xlane.f32.xlu2 %v1016_v33 }
 0x830   : > { %v1018_v58 = vpop.xlane.xlu2 %1017 }
 0x831   : > { %v1019_v62 = vmul.f32 %v1018_v58, %v2951_v29  ;;  %v2450_v58 = vld [vmem:[%s3333_s9 + $0x10] sm:$0xff] }
 0x833   : > { %v1020_v10 = vadd.f32 1e-05, %v1019_v62  ;;  %v2449_v62 = vld [vmem:[%s3333_s9 + $0x8] sm:$0xff] }
 0x835   : > { %2598 = vrsqrt.f32 %v1020_v10  ;;  %vm1027_vm5 = vweird.f32 %v1020_v10 }
 0x83b   : > { %v2599_v24 = vpop.eup %2598 }
 0x83c   : > { %v1022_v25 = vmul.f32 %v2599_v24, %v1020_v10  ;;  %vm1028_vm4 = vweird.f32 %v2599_v24  ;;  %v2502_v10 = vld [vmem:[%s3333_s9 + $0x1b0] sm:$0xff] }
 0x83d   : > { %vm1029_vm6 = vmor %vm1027_vm5, %vm1028_vm4 }
 0x83e   : > { %v1023_v26 = vmul.f32 %v2599_v24, %v1022_v25  ;;  %v2498_v25 = vld [vmem:[%s3333_s9 + $0x190] sm:$0xff] }
 0x840   : > { %v1024_v27 = vmul.f32 0.5, %v1023_v26  ;;  %v2506_v26 = vld [vmem:[%s3333_s9 + $0x1d0] sm:$0xff] }
 0x842   : > { %v1025_v28 = vsub.f32 1.5, %v1024_v27  ;;  %v2483_v27 = vld [vmem:[%s3333_s9 + $0x118] sm:$0xff] }
 0x844   : > { %v1026_v8 = vmul.f32 %v2599_v24, %v1025_v28  ;;  %v2491_v28 = vld [vmem:[%s3333_s9 + $0x158] sm:$0xff] }
 0x846   : > { %v1030_v31 = vsel %vm1029_vm6, %v2599_v24, %v1026_v8  ;;  %v2492_v24 = vld [vmem:[%s3333_s9 + $0x160] sm:$0xff]  ;;  %v2497_v8 = vld [vmem:[%s3333_s9 + $0x188] sm:$0xff] }
 0x847   : > { %v1031_v33 = vmul.f32 %v1030_v31, %v2954_v32  ;;  %v2463_v32 = vld [vmem:[%s3333_s9 + $0x78] sm:$0xff]  ;;  %v2482_v31 = vld [vmem:[%s3333_s9 + $0x110] sm:$0xff] }
 0x849   : > { %v1033_v34 = vmul.f32 %v1032_v30, %v1031_v33  ;;  %v2505_v30 = vld [vmem:[%s3333_s9 + $0x1c8] sm:$0xff]  ;;  %v2496_v33 = vld [vmem:[%s3333_s9 + $0x180] sm:$0xff] }
 0x84b   : > { %v3059_v35 = vadd.f32 %v1034_v2, %v1033_v34  ;;  %v2490_v2 = vld [vmem:[%s3333_s9 + $0x150] sm:$0xff]  ;;  %v2504_v34 = vld [vmem:[%s3333_s9 + $0x1c0] sm:$0xff] }
 0x84d   : > { %v1036_v36 = vpack.c.bf16 %v3059_v35, %v3059_v35 }
 0x84f   : > { %2159 = vmatmul.msk.bf16.vlgmr.msra.gmra.mxu2 %vm434_vm0, %v1036_v36  ;;  %2160 = vmatmul.msk.bf16.vlgmr.msra.gmra.mxu3 %vm434_vm0, %v1036_v36 }
 0x850   : > { %2161 = vmatmul.msk.bf16.vlgmr.msra.gmra.mxu0 %vm434_vm0, %v1036_v36  ;;  %2162 = vmatmul.msk.bf16.vlgmr.msrb.gmra.mxu1 %vm434_vm0, %v1036_v36 }
 0x851   : > { %1805 = vmatpush.bf16.msra.mxu0 %v2471_v37  ;;  %1818 = vmatpush.bf16.msrb.mxu1 %v2479_v38  ;;  %v2489_v37 = vld [vmem:[%s3333_s9 + $0x148] sm:$0xff]  ;;  %v2480_v38 = vld [vmem:[%s3333_s9 + $0x100] sm:$0xff] }
 0x852   : > { %1779 = vmatpush.bf16.msra.mxu2 %v2455_v39  ;;  %1792 = vmatpush.bf16.msra.mxu3 %v2463_v32  ;;  %v2488_v39 = vld [vmem:[%s3333_s9 + $0x140] sm:$0xff] }
 0x853   : > { %v1053_v32 = vld [vmem:[%s3332_s8] sm:$0xff] }
 0x855   : > { %1806 = vmatpush.bf16.msra.mxu0 %v2470_v40  ;;  %1819 = vmatpush.bf16.msrb.mxu1 %v2478_v41  ;;  %v1057_v40 = vperm.slane %v1053_v32, 2  ;;  %v1058_v41 = vperm.slane %v1053_v32, 3 }
 0x856   : > { %1780 = vmatpush.bf16.msra.mxu2 %v2454_v42  ;;  %1793 = vmatpush.bf16.msra.mxu3 %v2462_v43 }
 0x859   : > { %1807 = vmatpush.bf16.msra.mxu0 %v2469_v44  ;;  %1820 = vmatpush.bf16.msrb.mxu1 %v2477_v45 }
 0x85a   : > { %1781 = vmatpush.bf16.msra.mxu2 %v2453_v46  ;;  %1794 = vmatpush.bf16.msra.mxu3 %v2461_v47  ;;  %v1055_v46 = vperm.slane %v1053_v32, 0  ;;  %v1056_v47 = vperm.slane %v1053_v32, 1 }
 0x85d   : > { %1808 = vmatpush.bf16.msra.mxu0 %v2468_v48  ;;  %1821 = vmatpush.bf16.msrb.mxu1 %v2476_v49 }
 0x85e   : > { %1782 = vmatpush.bf16.msra.mxu2 %v2452_v50  ;;  %1795 = vmatpush.bf16.msra.mxu3 %v2460_v51 }
 0x85f   : > { %2163 = vmatmul.msk.bf16.vlgmr.msrb.gmra.mxu2 %vm434_vm0, %v1036_v36  ;;  %2164 = vmatmul.msk.bf16.vlgmr.msrb.gmra.mxu3 %vm434_vm0, %v1036_v36 }
 0x860   : > { %2165 = vmatmul.msk.bf16.vlgmr.msrb.gmra.mxu0 %vm434_vm0, %v1036_v36  ;;  %2166 = vmatmul.msk.bf16.vlgmr.msra.gmra.mxu1 %vm434_vm0, %v1036_v36  ;;  %v2481_v36 = vld [vmem:[%s3333_s9 + $0x108] sm:$0xff] }
 0x861   : > { %1809 = vmatpush.bf16.msra.mxu0 %v2467_v52  ;;  %1822 = vmatpush.bf16.msrb.mxu1 %v2475_v53 }
 0x862   : > { %1783 = vmatpush.bf16.msra.mxu2 %v2451_v54  ;;  %1796 = vmatpush.bf16.msra.mxu3 %v2459_v55 }
 0x865   : > { %1810 = vmatpush.bf16.msra.mxu0 %v2466_v56  ;;  %1823 = vmatpush.bf16.msrb.mxu1 %v2474_v57 }
 0x866   : > { %1784 = vmatpush.bf16.msra.mxu2 %v2450_v58  ;;  %1797 = vmatpush.bf16.msra.mxu3 %v2458_v59 }
 0x869   : > { %1811 = vmatpush.bf16.msra.mxu0 %v2465_v60  ;;  %1824 = vmatpush.bf16.msrb.mxu1 %v2473_v61  ;;  %v1061_v60 = vperm.slane %v1053_v32, 6  ;;  %v1062_v61 = vperm.slane %v1053_v32, 7 }
 0x86a   : > { %1785 = vmatpush.bf16.msra.mxu2 %v2449_v62  ;;  %1798 = vmatpush.bf16.msra.mxu3 %v2457_v63 }
 0x86d   : > { %1812 = vmatpush.bf16.msra.mxu0 %v2464_v0  ;;  %1825 = vmatpush.bf16.msrb.mxu1 %v2472_v1 }
 0x86e   : > { %1786 = vmatpush.bf16.msra.mxu2 %v2448_v5  ;;  %1799 = vmatpush.bf16.msra.mxu3 %v2456_v6 }
 0x871   : > { %1857 = vmatpush.bf16.msrb.mxu0 %v2503_v3  ;;  %1870 = vmatpush.bf16.msra.mxu1 %v2511_v4  ;;  %v1059_v3 = vperm.slane %v1053_v32, 4  ;;  %v1060_v4 = vperm.slane %v1053_v32, 5 }
 0x872   : > { %1831 = vmatpush.bf16.msrb.mxu2 %v2487_v7  ;;  %1844 = vmatpush.bf16.msrb.mxu3 %v2495_v9 }
 0x875   : > { %1858 = vmatpush.bf16.msrb.mxu0 %v2502_v10  ;;  %1871 = vmatpush.bf16.msra.mxu1 %v2510_v11 }
 0x876   : > { %1832 = vmatpush.bf16.msrb.mxu2 %v2486_v14  ;;  %1845 = vmatpush.bf16.msrb.mxu3 %v2494_v15 }
 0x879   : > { %1859 = vmatpush.bf16.msrb.mxu0 %v2501_v12  ;;  %1872 = vmatpush.bf16.msra.mxu1 %v2509_v13 }
 0x87a   : > { %1833 = vmatpush.bf16.msrb.mxu2 %v2485_v19  ;;  %1846 = vmatpush.bf16.msrb.mxu3 %v2493_v20 }
 0x87d   : > { %1860 = vmatpush.bf16.msrb.mxu0 %v2500_v17  ;;  %1873 = vmatpush.bf16.msra.mxu1 %v2508_v18 }
 0x87e   : > { %1834 = vmatpush.bf16.msrb.mxu2 %v2484_v23  ;;  %1847 = vmatpush.bf16.msrb.mxu3 %v2492_v24  ;;  %v1394_v23 = vperm.slane %v2946_v16, 3 }
 0x881   : > { %1861 = vmatpush.bf16.msrb.mxu0 %v2499_v21  ;;  %1874 = vmatpush.bf16.msra.mxu1 %v2507_v22 }
 0x882   : > { %1835 = vmatpush.bf16.msrb.mxu2 %v2483_v27  ;;  %1848 = vmatpush.bf16.msrb.mxu3 %v2491_v28 }
 0x885   : > { %1862 = vmatpush.bf16.msrb.mxu0 %v2498_v25  ;;  %1875 = vmatpush.bf16.msra.mxu1 %v2506_v26 }
 0x886   : > { %1836 = vmatpush.bf16.msrb.mxu2 %v2482_v31  ;;  %1849 = vmatpush.bf16.msrb.mxu3 %v2490_v2 }
 0x889   : > { %1863 = vmatpush.bf16.msrb.mxu0 %v2497_v8  ;;  %1876 = vmatpush.bf16.msra.mxu1 %v2505_v30 }
 0x88a   : > { %1837 = vmatpush.bf16.msrb.mxu2 %v2481_v36  ;;  %1850 = vmatpush.bf16.msrb.mxu3 %v2489_v37 }
 0x88d   : > { %1864 = vmatpush.bf16.msrb.mxu0 %v2496_v33  ;;  %1877 = vmatpush.bf16.msra.mxu1 %v2504_v34 }
 0x88e   : > { %1838 = vmatpush.bf16.msrb.mxu2 %v2480_v38  ;;  %1851 = vmatpush.bf16.msrb.mxu3 %v2488_v39 }
 0x8cd   : > { %v1189_v42 = vpop.f32.mrf.mxu0  ;;  %v1202_v43 = vpop.f32.mrf.mxu1 }
 0x8ce   : > { %v1190_v44 = vadd.f32 %v1189_v42, %v1057_v40  ;;  %v1203_v45 = vadd.f32 %v1202_v43, %v1058_v41 }
 0x8d0   : > { %v1260_v48 = vpack.c.bf16 %v1190_v44, %v1190_v44  ;;  %v1261_v49 = vpack.c.bf16 %v1203_v45, %v1203_v45 }
 0x8d2   : > { %1813 = vmatmul.bf16.vlgmr.msra.gmra.mxu0 %v1260_v48  ;;  %1826 = vmatmul.bf16.vlgmr.msrb.gmra.mxu1 %v1261_v49  ;;  %v1163_v50 = vpop.f32.mrf.mxu2  ;;  %v1176_v51 = vpop.f32.mrf.mxu3 }
 0x8d3   : > { %v1164_v52 = vadd.f32 %v1163_v50, %v1055_v46  ;;  %v1177_v53 = vadd.f32 %v1176_v51, %v1056_v47 }
 0x8d5   : > { %v1258_v54 = vpack.c.bf16 %v1164_v52, %v1164_v52  ;;  %v1259_v55 = vpack.c.bf16 %v1177_v53, %v1177_v53  ;;  %v1191_v56 = vpop.f32.mrf.mxu0  ;;  %v1204_v57 = vpop.f32.mrf.mxu1 }
 0x8d7   : > { %1787 = vmatmul.bf16.vlgmr.msra.gmra.mxu2 %v1258_v54  ;;  %1800 = vmatmul.bf16.vlgmr.msra.gmra.mxu3 %v1259_v55 }
 0x8da   : > { %v1165_v58 = vpop.f32.mrf.mxu2  ;;  %v1178_v59 = vpop.f32.mrf.mxu3 }
 0x8dd   : > { %v1241_v62 = vpop.f32.mrf.mxu0  ;;  %v1254_v63 = vpop.f32.mrf.mxu1 }
 0x8de   : > { %v1242_v0 = vadd.f32 %v1241_v62, %v1061_v60  ;;  %v1255_v1 = vadd.f32 %v1254_v63, %v1062_v61 }
 0x8e0   : > { %v1264_v5 = vpack.c.bf16 %v1242_v0, %v1242_v0  ;;  %v1265_v6 = vpack.c.bf16 %v1255_v1, %v1255_v1 }
 0x8e2   : > { %1865 = vmatmul.bf16.vlgmr.msrb.gmra.mxu0 %v1264_v5  ;;  %1878 = vmatmul.bf16.vlgmr.msra.gmra.mxu1 %v1265_v6  ;;  %v1215_v7 = vpop.f32.mrf.mxu2  ;;  %v1228_v9 = vpop.f32.mrf.mxu3 }
 0x8e3   : > { %v1216_v10 = vadd.f32 %v1215_v7, %v1059_v3  ;;  %v1229_v11 = vadd.f32 %v1228_v9, %v1060_v4 }
 0x8e5   : > { %v1262_v12 = vpack.c.bf16 %v1216_v10, %v1216_v10  ;;  %v1263_v13 = vpack.c.bf16 %v1229_v11, %v1229_v11  ;;  %v1243_v14 = vpop.f32.mrf.mxu0  ;;  %v1256_v15 = vpop.f32.mrf.mxu1 }
 0x8e7   : > { %1839 = vmatmul.bf16.vlgmr.msrb.gmra.mxu2 %v1262_v12  ;;  %1852 = vmatmul.bf16.vlgmr.msrb.gmra.mxu3 %v1263_v13 }
 0x8ea   : > { %v1217_v17 = vpop.f32.mrf.mxu2  ;;  %v1230_v18 = vpop.f32.mrf.mxu3 }
 0x94f   : > { %v1814_v19 = vpop.f32.mrf.mxu0  ;;  %v1827_v20 = vpop.f32.mrf.mxu1 }
 0x957   : > { %v1816_v21 = vpop.f32.mrf.mxu0  ;;  %v1829_v22 = vpop.f32.mrf.mxu1 }
 0x95a   : > { %v1788_v24 = vpop.f32.mrf.mxu2  ;;  %v1801_v25 = vpop.f32.mrf.mxu3 }
 0x95b   : > { %v1789_v26 = vadd.f32 %v1788_v24, %v1394_v23 }
 0x95d   : > { %v1802_v8 = vadd.f32 %v1801_v25, %v1789_v26 }
 0x95f   : > { %v1866_v27 = vpop.f32.mrf.mxu0  ;;  %v1879_v28 = vpop.f32.mrf.mxu1  ;;  %v1815_v2 = vadd.f32 %v1814_v19, %v1802_v8 }
 0x961   : > { %v1828_v36 = vadd.f32 %v1827_v20, %v1815_v2 }
 0x962   : > { %v1790_v30 = vpop.f32.mrf.mxu2  ;;  %v1803_v31 = vpop.f32.mrf.mxu3 }
 0x967   : > { %v1868_v33 = vpop.f32.mrf.mxu0  ;;  %v1881_v34 = vpop.f32.mrf.mxu1 }
 0x96a   : > { %v1840_v37 = vpop.f32.mrf.mxu2  ;;  %v1853_v38 = vpop.f32.mrf.mxu3 }
 0x96b   : > { %v1841_v39 = vadd.f32 %v1840_v37, %v1828_v36 }
 0x96d   : > { %v1854_v32 = vadd.f32 %v1853_v38, %v1841_v39 }
 0x96f   : > { %v1867_v40 = vadd.f32 %v1866_v27, %v1854_v32 }
 0x971   : > { %v1880_v41 = vadd.f32 %v1879_v28, %v1867_v40 }
 0x972   : > { %v1842_v42 = vpop.f32.mrf.mxu2  ;;  %v1855_v43 = vpop.f32.mrf.mxu3 }
 0x973   : > { %v1883_v44 = vadd.f32 %v1880_v41, %v3059_v35 }
 0x975   : > { %v1884_v45 = vsel %vm434_vm0, %v1883_v44, 0.0 }
 0x976   : > { %1885 = vadd.xlane.f32.xlu1 %v1884_v45 }
 0x9e9   : > { %v1886_v46 = vpop.xlane.xlu1 %1885 }
 0x9ea   : > { %v1887_v47 = vmul.f32 %v1886_v46, %v2951_v29 }
 0x9ec   : > { %v1888_v48 = vsub.f32 %v1883_v44, %v1887_v47 }
 0x9ee   : > { %v1889_v49 = vmul.f32 %v1888_v48, %v1888_v48 }
 0x9f0   : > { %v1890_v50 = vsel %vm434_vm0, %v1889_v49, 0.0 }
 0x9f1   : > { %1891 = vadd.xlane.f32.xlu1 %v1890_v50 }
 0x9f2   : > { %2629 = shalt.err (!%p2626_p3)
}
 0x9f3   : > { %s2710_s16 = smov 128   ;;  %s2711_s2 = smov 8   ;;  %v1906_v59 = vperm.slane %v2946_v16, 4  ;;  %v1908_v61 = vperm.slane %v2946_v16, 5 }
 0x9f4   : > { %2513 = dma.vmem_to_hbm [thread:$0]  (%p2810_p5), %s1930_s14, 512, %s1932_s15, %s1912_s13, %s2710_s16, %s2710_s16, %s2711_s2  }
 0x9f5   : > { %s2058_s3 = sshll.u32 %s2865_s12, 3  ;;  %s2427_s4 = sshll.u32 %s2793_s21, 3 }
 0x9f6   : > { %s1944_s29 = scalar_lea.hbm %s3335_s11, %s2427_s4  ;;  %s401_s30 = scalar_lea.vmem [#allocation5], %s2058_s3 }
 0x9f7   : > { %s1946_s14 = sshll.u32 %s401_s30, 4  ;;  %s1948_s15 = sshll.u32 %s1944_s29, 4  ;;  %s1947_s14 = int_to_ptr.vmem [resolvable:$true] %s1946_s14  ;;  %s1949_s15 = int_to_ptr.hbm [resolvable:$true] %s1948_s15 }
 0x9f8   : > { %s1917_s21 = scalar_lea.sflag [#allocation6], %s2865_s12  ;;  %s2644_s13 = sshra.s32 %s1949_s15, 4  ;;  %s2645_s13 = int_to_ptr.hbm [resolvable:$true] %s2644_s13 }
 0x9f9   : > { %s2646_s22 = scalar_lea.hbm %s2645_s13, 8  ;;  %s2650_s1 = scalar_lea.hbm %s3335_s11, 16 }
 0x9fa   : > { %p2647_p4 = scmp.ne.s32.totalorder %s2645_s13, %s2646_s22  ;;  %p2651_p9 = scmp.lt.s32.totalorder %s2645_s13, %s3335_s11 }
 0x9fb   : > { %p2652_p10 = scmp.lt.s32.totalorder %s2650_s1, %s2646_s22 }
 0x9fc   : > { %p2648_p7 = pnand %p2647_p4, %p2810_p5 }
 0x9fd   : > { %p2653_p11 = por %p2652_p10, %p2651_p9 }
 0x9fe   : > { %p2649_p8 = pneg %p2648_p7 }
 0xa00   : > { %p2654_p12 = pnand %p2653_p11, %p2649_p8 }
 0xa64   : > { %v1892_v35 = vpop.xlane.xlu1 %1891 }
 0xa65   : > { %v1893_v51 = vmul.f32 %v1892_v35, %v2951_v29 }
 0xa67   : > { %v1894_v52 = vadd.f32 1e-05, %v1893_v51 }
 0xa69   : > { %2600 = vrsqrt.f32 %v1894_v52  ;;  %vm1901_vm8 = vweird.f32 %v1894_v52 }
 0xa6f   : > { %v2601_v53 = vpop.eup %2600 }
 0xa70   : > { %v1896_v54 = vmul.f32 %v2601_v53, %v1894_v52  ;;  %vm1902_vm7 = vweird.f32 %v2601_v53 }
 0xa71   : > { %vm1903_vm9 = vmor %vm1901_vm8, %vm1902_vm7 }
 0xa72   : > { %v1897_v55 = vmul.f32 %v2601_v53, %v1896_v54 }
 0xa74   : > { %v1898_v56 = vmul.f32 0.5, %v1897_v55 }
 0xa76   : > { %v1899_v57 = vsub.f32 1.5, %v1898_v56 }
 0xa78   : > { %v1900_v58 = vmul.f32 %v2601_v53, %v1899_v57 }
 0xa7a   : > { %v1904_v29 = vsel %vm1903_vm9, %v2601_v53, %v1900_v58 }
 0xa7b   : > { %v1905_v60 = vmul.f32 %v1904_v29, %v1888_v48 }
 0xa7d   : > { %v1907_v62 = vmul.f32 %v1906_v59, %v1905_v60 }
 0xa7f   : > { %v1909_v63 = vadd.f32 %v1908_v61, %v1907_v62 }
 0xa81   : > { %1910 = vst.msk [vmem:[%s401_s30] sm:$0xff] %vm434_vm0, %v1909_v63 }
 0xa82   : > { %2657 = shalt.err (!%p2654_p12)
}
 0xa83   : > { %2514 = dma.vmem_to_hbm [thread:$0]  (%p2810_p5), %s1947_s14, 128, %s1949_s15, %s1917_s21  }
 0xa84 PF: > { %p2524_p13 = scmp.ge.s32.totalorder %s2696_s20, 2  ;;  %s1960_s12 = sand.u32 1, %s2684_s17  }
 0xa85   : > { %s1961_s3 = scalar_lea.sflag [#allocation4], %s1960_s12 }
 0xa86   : > { %p2518_p0 = pnand %p2524_p13, %p2814_p6 }
 0xa88   : > { %p2519_p1 = pneg %p2518_p0 }
 0xa8a   : > { %2675 = dma.done.wait (%p2519_p1), %s1961_s3, 512  }
 0xa8b   : > { %2677 = vsyncadd (%p2519_p1), %s1961_s3, 4294966784  ;;  %s1971_s4 = scalar_lea.sflag [#allocation6], %s1960_s12 }
 0xa8c   : > { %2679 = dma.done.wait (%p2519_p1), %s1971_s4, 128  }
 0xa8d   : > { %2681 = vsyncadd (%p2519_p1), %s1971_s4, 4294967168  ;;  %p25_p5 = scmp.ge.s32.totalorder %s2797_s23, 4   ;;  %s3350_s17 = smov %s2688_s18 }
 0xa8e   : > { %s3351_s18 = smov %s2692_s19  ;;  %s3352_s19 = smov %s2808_s26 }
 0xa8f   : > { %s3353_s20 = smov %s2797_s23  ;;  %27 = sbr.rel (!%p25_p5) target bundleno = 12 (0xc), region = 124 }
 0xa94   :  { %1977 = vsyncpa [#allocation4], 1 }
 0xa95   :  { %1979 = vsyncpa [#allocation4 + $0x1], 1 }
 0xa96   :  { %1980 = vsyncpa [#allocation6], 1 }
 0xa97   :  { %1982 = vsyncpa [#allocation6 + $0x1], 1 }

</bundles_post_ra>
